<compile_context>
chip_gen: v5e
topology: v5e:2x2
jax: 0.10.0
libtpu: 0.0.40
codegen_flags: <defaults>
</compile_context>

<pallas_src>
import jax
import jax.numpy as jnp
from jax.experimental import pallas as pl
from jax.experimental.pallas import tpu as pltpu


def lstm_fused_kernel(x_ref, wih_ref, whh_ref, b_ref, wfc_ref, bfc_ref, out_ref):
    """All T LSTM steps for one batch block, then the final FC.

    x_ref   : (Bb, T, I)   input block (batch_first)
    wih_ref : (4, I, H)    W_ih^T split per gate (PyTorch order i, f, g, o)
    whh_ref : (4, H, H)    W_hh^T split per gate
    b_ref   : (4, 1, H)    b_ih + b_hh split per gate
    wfc_ref : (H, Opad)    W_fc^T zero-padded to lane-dense width
    bfc_ref : (1, Opad)    b_fc zero-padded
    out_ref : (Bb, Opad)
    """
    Bb, T, I = x_ref.shape
    H = whh_ref.shape[-1]
    f32 = jnp.float32

    def sig(z):  # sigmoid via a single tanh (EUP) instead of exp + divide
        return 0.5 * jnp.tanh(0.5 * z) + 0.5

    # ---- Input projections for ALL timesteps (off the recurrent critical path).
    # One batched matmul per gate over the flattened (Bb*T) rows; the additive
    # bias is folded in here so the time loop does one VPU add per gate.
    x2d = x_ref[...].reshape(Bb * T, I)

    def xproj(g):
        p = jnp.dot(x2d, wih_ref[g], preferred_element_type=f32)   # (Bb*T, H)
        return (p + b_ref[g]).reshape(Bb, T, H)                    # (Bb, T, H)

    px_i, px_f, px_g, px_o = xproj(0), xproj(1), xproj(2), xproj(3)

    # Recurrent weights hoisted out of the time loop.
    w_hi, w_hf, w_hg, w_ho = whh_ref[0], whh_ref[1], whh_ref[2], whh_ref[3]

    h = jnp.zeros((Bb, H), f32)
    c = jnp.zeros((Bb, H), f32)

    # T is tiny, so the recurrence is statically unrolled (full LLO scheduler
    # visibility, zero-cost static time slices of the precomputed projections).
    # TODO(synk): for long sequences / large H, switch to lax.fori_loop with a
    # dynamic pl.ds() time slice and bf16 matmul operands to bound code size
    # and VMEM (v7x has 64 MiB/TC).
    for t in range(T):
        i_g = sig(px_i[:, t, :] + jnp.dot(h, w_hi, preferred_element_type=f32))
        f_g = sig(px_f[:, t, :] + jnp.dot(h, w_hf, preferred_element_type=f32))
        g_g = jnp.tanh(px_g[:, t, :] + jnp.dot(h, w_hg, preferred_element_type=f32))
        o_g = sig(px_o[:, t, :] + jnp.dot(h, w_ho, preferred_element_type=f32))
        c = f_g * c + i_g * g_g
        h = o_g * jnp.tanh(c)

    # Final FC on the last hidden state, lane-dense padded output (unmasked vst).
    out_ref[...] = (jnp.dot(h, wfc_ref[...], preferred_element_type=f32)
                    + bfc_ref[...]).astype(out_ref.dtype)


def lstm_model_forward(x, params, *, b_block=None):
    """x: (B, T, I) float32 (batch_first). Returns (B, O) = fc(h_T)."""
    B, T, I = x.shape
    H = params["w_hh"].shape[1]
    O = params["w_fc"].shape[0]

    # Split per gate (PyTorch order i,f,g,o) and transpose for row-major matmuls.
    wih_g = jnp.transpose(params["w_ih"].reshape(4, H, I), (0, 2, 1))   # (4, I, H)
    whh_g = jnp.transpose(params["w_hh"].reshape(4, H, H), (0, 2, 1))   # (4, H, H)
    b_g = (params["b_ih"] + params["b_hh"]).reshape(4, 1, H)            # (4, 1, H)

    # Lane-dense FC output: pad O up to a multiple of 128 (>= 128).
    O_pad = max(128, ((O + 127) // 128) * 128)
    wfc_p = jnp.pad(params["w_fc"].T, ((0, 0), (0, O_pad - O)))          # (H, O_pad)
    bfc_p = jnp.pad(params["b_fc"].reshape(1, -1), ((0, 0), (0, O_pad - O)))

    Bb = B if b_block is None else min(b_block, B)
    grid = (pl.cdiv(B, Bb),)

    out_pad = pl.pallas_call(
        lstm_fused_kernel,
        out_shape=jax.ShapeDtypeStruct((B, O_pad), jnp.float32),
        grid=grid,
        in_specs=[
            pl.BlockSpec((Bb, T, I), lambda b: (b, 0, 0)),     # x batch block
            pl.BlockSpec((4, I, H), lambda b: (0, 0, 0)),      # W_ih^T per gate
            pl.BlockSpec((4, H, H), lambda b: (0, 0, 0)),      # W_hh^T per gate
            pl.BlockSpec((4, 1, H), lambda b: (0, 0, 0)),      # bias per gate
            pl.BlockSpec((H, O_pad), lambda b: (0, 0)),        # W_fc^T (padded)
            pl.BlockSpec((1, O_pad), lambda b: (0, 0)),        # b_fc (padded)
        ],
        out_specs=pl.BlockSpec((Bb, O_pad), lambda b: (b, 0)),
        compiler_params=pltpu.CompilerParams(
            dimension_semantics=("parallel",)),  # batch axis -> both TCs on v7x
    )(x, wih_g, whh_g, b_g, wfc_p, bfc_p)

    return out_pad[:, :O]


def lstm_model_reference(x, params):
    """Pure-JAX reference replicating PyTorch nn.LSTM + nn.Linear semantics."""
    B, T, I = x.shape
    H = params["w_hh"].shape[1]
    wih_t = params["w_ih"].T
    whh_t = params["w_hh"].T
    b = params["b_ih"] + params["b_hh"]

    def step(carry, x_t):
        h, c = carry
        gates = x_t @ wih_t + h @ whh_t + b
        i_g = jax.nn.sigmoid(gates[:, 0 * H:1 * H])
        f_g = jax.nn.sigmoid(gates[:, 1 * H:2 * H])
        g_g = jnp.tanh(gates[:, 2 * H:3 * H])
        o_g = jax.nn.sigmoid(gates[:, 3 * H:4 * H])
        c_new = f_g * c + i_g * g_g
        h_new = o_g * jnp.tanh(c_new)
        return (h_new, c_new), None

    h0 = jnp.zeros((B, H), jnp.float32)
    c0 = jnp.zeros((B, H), jnp.float32)
    (h_last, _), _ = jax.lax.scan(step, (h0, c0), jnp.transpose(x, (1, 0, 2)))
    return h_last @ params["w_fc"].T + params["b_fc"]


def init_params(key, input_size, hidden_size, output_size):
    ks = jax.random.split(key, 6)
    s = 1.0 / jnp.sqrt(hidden_size)
    return {
        "w_ih": jax.random.uniform(ks[0], (4 * hidden_size, input_size),
                                   jnp.float32, -s, s),
        "w_hh": jax.random.uniform(ks[1], (4 * hidden_size, hidden_size),
                                   jnp.float32, -s, s),
        "b_ih": jax.random.uniform(ks[2], (4 * hidden_size,), jnp.float32, -s, s),
        "b_hh": jax.random.uniform(ks[3], (4 * hidden_size,), jnp.float32, -s, s),
        "w_fc": jax.random.uniform(ks[4], (output_size, hidden_size),
                                   jnp.float32, -s, s),
        "b_fc": jax.random.uniform(ks[5], (output_size,), jnp.float32, -s, s),
    }


if __name__ == "__main__":
    B, T, I, H, O = 2, 8, 4, 32, 1

    key = jax.random.PRNGKey(0)
    k_x, k_p = jax.random.split(key)
    x = jax.random.normal(k_x, (B, T, I), jnp.float32)
    params = init_params(k_p, I, H, O)

    out = jax.block_until_ready(lstm_model_forward(x, params))
    ref = lstm_model_reference(x, params)

    assert out.shape == (B, O)
    assert jnp.allclose(out, ref, atol=1e-5, rtol=1e-5), (out, ref)

    print("KERNEL_OK")
</pallas_src>

<mosaic_0001>
module attributes {stable_mosaic.version = 11 : i64} {
  func.func @lstm_fused_kernel(%arg0: i32, %arg1: memref<2x8x4xf32, #tpu.memory_space<vmem>>, %arg2: memref<4x4x32xf32, #tpu.memory_space<vmem>>, %arg3: memref<4x32x32xf32, #tpu.memory_space<vmem>>, %arg4: memref<4x1x32xf32, #tpu.memory_space<vmem>>, %arg5: memref<32x128xf32, #tpu.memory_space<vmem>>, %arg6: memref<1x128xf32, #tpu.memory_space<vmem>>, %arg7: memref<2x128xf32, #tpu.memory_space<vmem>>) attributes {dimension_semantics = [#tpu.dimension_semantics<parallel>], iteration_bounds = array<i64: 1>, scalar_prefetch = 0 : i64, scratch_operands = 0 : i64, tpu.core_type = #tpu.core_type<tc>, window_params = [{transform_indices = @transform_0, window_bounds = array<i64: 2, 8, 4>}, {pipeline_mode = #tpu.pipeline_mode<synchronous>, transform_indices = @transform_1, window_bounds = array<i64: 4, 4, 32>}, {pipeline_mode = #tpu.pipeline_mode<synchronous>, transform_indices = @transform_2, window_bounds = array<i64: 4, 32, 32>}, {pipeline_mode = #tpu.pipeline_mode<synchronous>, transform_indices = @transform_3, window_bounds = array<i64: 4, 1, 32>}, {pipeline_mode = #tpu.pipeline_mode<synchronous>, transform_indices = @transform_4, window_bounds = array<i64: 32, 128>}, {pipeline_mode = #tpu.pipeline_mode<synchronous>, transform_indices = @transform_5, window_bounds = array<i64: 1, 128>}, {transform_indices = @transform_6, window_bounds = array<i64: 2, 128>}]} {
    %c0 = arith.constant 0 : index
    %c0_0 = arith.constant 0 : index
    %c0_1 = arith.constant 0 : index
    %0 = vector.load %arg1[%c0, %c0_0, %c0_1] : memref<2x8x4xf32, #tpu.memory_space<vmem>>, vector<2x8x4xf32>
    %1 = vector.shape_cast %0 : vector<2x8x4xf32> to vector<16x4xf32>
    %c0_2 = arith.constant 0 : index
    %c0_3 = arith.constant 0 : index
    %c0_4 = arith.constant 0 : index
    %2 = vector.load %arg2[%c0_2, %c0_3, %c0_4] : memref<4x4x32xf32, #tpu.memory_space<vmem>>, vector<1x4x32xf32>
    %3 = vector.shape_cast %2 : vector<1x4x32xf32> to vector<4x32xf32>
    %cst = arith.constant dense<0.000000e+00> : vector<16x32xf32>
    %4 = tpu.matmul %1, %3, %cst {dimension_numbers = #tpu.dot_dimension_numbers<[1], [0], [0], [1], [0, 0, 1, 1], [], []>} : vector<16x4xf32>, vector<4x32xf32>, vector<16x32xf32> -> vector<16x32xf32>
    %c0_5 = arith.constant 0 : index
    %c0_6 = arith.constant 0 : index
    %c0_7 = arith.constant 0 : index
    %5 = vector.load %arg4[%c0_5, %c0_6, %c0_7] : memref<4x1x32xf32, #tpu.memory_space<vmem>>, vector<1x1x32xf32>
    %6 = vector.shape_cast %5 : vector<1x1x32xf32> to vector<1x32xf32>
    %7 = vector.broadcast %6 : vector<1x32xf32> to vector<16x32xf32>
    %8 = arith.addf %4, %7 : vector<16x32xf32>
    %9 = vector.shape_cast %8 : vector<16x32xf32> to vector<2x8x32xf32>
    %c1 = arith.constant 1 : index
    %c0_8 = arith.constant 0 : index
    %c0_9 = arith.constant 0 : index
    %10 = vector.load %arg2[%c1, %c0_8, %c0_9] : memref<4x4x32xf32, #tpu.memory_space<vmem>>, vector<1x4x32xf32>
    %11 = vector.shape_cast %10 : vector<1x4x32xf32> to vector<4x32xf32>
    %cst_10 = arith.constant dense<0.000000e+00> : vector<16x32xf32>
    %12 = tpu.matmul %1, %11, %cst_10 {dimension_numbers = #tpu.dot_dimension_numbers<[1], [0], [0], [1], [0, 0, 1, 1], [], []>} : vector<16x4xf32>, vector<4x32xf32>, vector<16x32xf32> -> vector<16x32xf32>
    %c1_11 = arith.constant 1 : index
    %c0_12 = arith.constant 0 : index
    %c0_13 = arith.constant 0 : index
    %13 = vector.load %arg4[%c1_11, %c0_12, %c0_13] : memref<4x1x32xf32, #tpu.memory_space<vmem>>, vector<1x1x32xf32>
    %14 = vector.shape_cast %13 : vector<1x1x32xf32> to vector<1x32xf32>
    %15 = vector.broadcast %14 : vector<1x32xf32> to vector<16x32xf32>
    %16 = arith.addf %12, %15 : vector<16x32xf32>
    %17 = vector.shape_cast %16 : vector<16x32xf32> to vector<2x8x32xf32>
    %c2 = arith.constant 2 : index
    %c0_14 = arith.constant 0 : index
    %c0_15 = arith.constant 0 : index
    %18 = vector.load %arg2[%c2, %c0_14, %c0_15] : memref<4x4x32xf32, #tpu.memory_space<vmem>>, vector<1x4x32xf32>
    %19 = vector.shape_cast %18 : vector<1x4x32xf32> to vector<4x32xf32>
    %cst_16 = arith.constant dense<0.000000e+00> : vector<16x32xf32>
    %20 = tpu.matmul %1, %19, %cst_16 {dimension_numbers = #tpu.dot_dimension_numbers<[1], [0], [0], [1], [0, 0, 1, 1], [], []>} : vector<16x4xf32>, vector<4x32xf32>, vector<16x32xf32> -> vector<16x32xf32>
    %c2_17 = arith.constant 2 : index
    %c0_18 = arith.constant 0 : index
    %c0_19 = arith.constant 0 : index
    %21 = vector.load %arg4[%c2_17, %c0_18, %c0_19] : memref<4x1x32xf32, #tpu.memory_space<vmem>>, vector<1x1x32xf32>
    %22 = vector.shape_cast %21 : vector<1x1x32xf32> to vector<1x32xf32>
    %23 = vector.broadcast %22 : vector<1x32xf32> to vector<16x32xf32>
    %24 = arith.addf %20, %23 : vector<16x32xf32>
    %25 = vector.shape_cast %24 : vector<16x32xf32> to vector<2x8x32xf32>
    %c3 = arith.constant 3 : index
    %c0_20 = arith.constant 0 : index
    %c0_21 = arith.constant 0 : index
    %26 = vector.load %arg2[%c3, %c0_20, %c0_21] : memref<4x4x32xf32, #tpu.memory_space<vmem>>, vector<1x4x32xf32>
    %27 = vector.shape_cast %26 : vector<1x4x32xf32> to vector<4x32xf32>
    %cst_22 = arith.constant dense<0.000000e+00> : vector<16x32xf32>
    %28 = tpu.matmul %1, %27, %cst_22 {dimension_numbers = #tpu.dot_dimension_numbers<[1], [0], [0], [1], [0, 0, 1, 1], [], []>} : vector<16x4xf32>, vector<4x32xf32>, vector<16x32xf32> -> vector<16x32xf32>
    %c3_23 = arith.constant 3 : index
    %c0_24 = arith.constant 0 : index
    %c0_25 = arith.constant 0 : index
    %29 = vector.load %arg4[%c3_23, %c0_24, %c0_25] : memref<4x1x32xf32, #tpu.memory_space<vmem>>, vector<1x1x32xf32>
    %30 = vector.shape_cast %29 : vector<1x1x32xf32> to vector<1x32xf32>
    %31 = vector.broadcast %30 : vector<1x32xf32> to vector<16x32xf32>
    %32 = arith.addf %28, %31 : vector<16x32xf32>
    %33 = vector.shape_cast %32 : vector<16x32xf32> to vector<2x8x32xf32>
    %c0_26 = arith.constant 0 : index
    %c0_27 = arith.constant 0 : index
    %c0_28 = arith.constant 0 : index
    %34 = vector.load %arg3[%c0_26, %c0_27, %c0_28] : memref<4x32x32xf32, #tpu.memory_space<vmem>>, vector<1x32x32xf32>
    %35 = vector.shape_cast %34 : vector<1x32x32xf32> to vector<32x32xf32>
    %c1_29 = arith.constant 1 : index
    %c0_30 = arith.constant 0 : index
    %c0_31 = arith.constant 0 : index
    %36 = vector.load %arg3[%c1_29, %c0_30, %c0_31] : memref<4x32x32xf32, #tpu.memory_space<vmem>>, vector<1x32x32xf32>
    %37 = vector.shape_cast %36 : vector<1x32x32xf32> to vector<32x32xf32>
    %c2_32 = arith.constant 2 : index
    %c0_33 = arith.constant 0 : index
    %c0_34 = arith.constant 0 : index
    %38 = vector.load %arg3[%c2_32, %c0_33, %c0_34] : memref<4x32x32xf32, #tpu.memory_space<vmem>>, vector<1x32x32xf32>
    %39 = vector.shape_cast %38 : vector<1x32x32xf32> to vector<32x32xf32>
    %c3_35 = arith.constant 3 : index
    %c0_36 = arith.constant 0 : index
    %c0_37 = arith.constant 0 : index
    %40 = vector.load %arg3[%c3_35, %c0_36, %c0_37] : memref<4x32x32xf32, #tpu.memory_space<vmem>>, vector<1x32x32xf32>
    %41 = vector.shape_cast %40 : vector<1x32x32xf32> to vector<32x32xf32>
    %cst_38 = arith.constant 0.000000e+00 : f32
    %42 = vector.broadcast %cst_38 : f32 to vector<2x32xf32>
    %cst_39 = arith.constant 0.000000e+00 : f32
    %43 = vector.broadcast %cst_39 : f32 to vector<2x32xf32>
    %44 = vector.extract_strided_slice %9 {offsets = [0, 0, 0], sizes = [2, 1, 32], strides = [1, 1, 1]} : vector<2x8x32xf32> to vector<2x1x32xf32>
    %45 = vector.shape_cast %44 : vector<2x1x32xf32> to vector<2x32xf32>
    %cst_40 = arith.constant dense<0.000000e+00> : vector<2x32xf32>
    %46 = tpu.matmul %42, %35, %cst_40 {dimension_numbers = #tpu.dot_dimension_numbers<[1], [0], [0], [1], [0, 0, 1, 1], [], []>} : vector<2x32xf32>, vector<32x32xf32>, vector<2x32xf32> -> vector<2x32xf32>
    %47 = arith.addf %45, %46 : vector<2x32xf32>
    %cst_41 = arith.constant 5.000000e-01 : f32
    %48 = vector.broadcast %cst_41 : f32 to vector<2x32xf32>
    %49 = arith.mulf %48, %47 : vector<2x32xf32>
    %50 = math.tanh %49 : vector<2x32xf32>
    %cst_42 = arith.constant 5.000000e-01 : f32
    %51 = vector.broadcast %cst_42 : f32 to vector<2x32xf32>
    %52 = arith.mulf %51, %50 : vector<2x32xf32>
    %cst_43 = arith.constant 5.000000e-01 : f32
    %53 = vector.broadcast %cst_43 : f32 to vector<2x32xf32>
    %54 = arith.addf %52, %53 : vector<2x32xf32>
    %55 = vector.extract_strided_slice %17 {offsets = [0, 0, 0], sizes = [2, 1, 32], strides = [1, 1, 1]} : vector<2x8x32xf32> to vector<2x1x32xf32>
    %56 = vector.shape_cast %55 : vector<2x1x32xf32> to vector<2x32xf32>
    %cst_44 = arith.constant dense<0.000000e+00> : vector<2x32xf32>
    %57 = tpu.matmul %42, %37, %cst_44 {dimension_numbers = #tpu.dot_dimension_numbers<[1], [0], [0], [1], [0, 0, 1, 1], [], []>} : vector<2x32xf32>, vector<32x32xf32>, vector<2x32xf32> -> vector<2x32xf32>
    %58 = arith.addf %56, %57 : vector<2x32xf32>
    %cst_45 = arith.constant 5.000000e-01 : f32
    %59 = vector.broadcast %cst_45 : f32 to vector<2x32xf32>
    %60 = arith.mulf %59, %58 : vector<2x32xf32>
    %61 = math.tanh %60 : vector<2x32xf32>
    %cst_46 = arith.constant 5.000000e-01 : f32
    %62 = vector.broadcast %cst_46 : f32 to vector<2x32xf32>
    %63 = arith.mulf %62, %61 : vector<2x32xf32>
    %cst_47 = arith.constant 5.000000e-01 : f32
    %64 = vector.broadcast %cst_47 : f32 to vector<2x32xf32>
    %65 = arith.addf %63, %64 : vector<2x32xf32>
    %66 = vector.extract_strided_slice %25 {offsets = [0, 0, 0], sizes = [2, 1, 32], strides = [1, 1, 1]} : vector<2x8x32xf32> to vector<2x1x32xf32>
    %67 = vector.shape_cast %66 : vector<2x1x32xf32> to vector<2x32xf32>
    %cst_48 = arith.constant dense<0.000000e+00> : vector<2x32xf32>
    %68 = tpu.matmul %42, %39, %cst_48 {dimension_numbers = #tpu.dot_dimension_numbers<[1], [0], [0], [1], [0, 0, 1, 1], [], []>} : vector<2x32xf32>, vector<32x32xf32>, vector<2x32xf32> -> vector<2x32xf32>
    %69 = arith.addf %67, %68 : vector<2x32xf32>
    %70 = math.tanh %69 : vector<2x32xf32>
    %71 = vector.extract_strided_slice %33 {offsets = [0, 0, 0], sizes = [2, 1, 32], strides = [1, 1, 1]} : vector<2x8x32xf32> to vector<2x1x32xf32>
    %72 = vector.shape_cast %71 : vector<2x1x32xf32> to vector<2x32xf32>
    %cst_49 = arith.constant dense<0.000000e+00> : vector<2x32xf32>
    %73 = tpu.matmul %42, %41, %cst_49 {dimension_numbers = #tpu.dot_dimension_numbers<[1], [0], [0], [1], [0, 0, 1, 1], [], []>} : vector<2x32xf32>, vector<32x32xf32>, vector<2x32xf32> -> vector<2x32xf32>
    %74 = arith.addf %72, %73 : vector<2x32xf32>
    %cst_50 = arith.constant 5.000000e-01 : f32
    %75 = vector.broadcast %cst_50 : f32 to vector<2x32xf32>
    %76 = arith.mulf %75, %74 : vector<2x32xf32>
    %77 = math.tanh %76 : vector<2x32xf32>
    %cst_51 = arith.constant 5.000000e-01 : f32
    %78 = vector.broadcast %cst_51 : f32 to vector<2x32xf32>
    %79 = arith.mulf %78, %77 : vector<2x32xf32>
    %cst_52 = arith.constant 5.000000e-01 : f32
    %80 = vector.broadcast %cst_52 : f32 to vector<2x32xf32>
    %81 = arith.addf %79, %80 : vector<2x32xf32>
    %82 = arith.mulf %65, %43 : vector<2x32xf32>
    %83 = arith.mulf %54, %70 : vector<2x32xf32>
    %84 = arith.addf %82, %83 : vector<2x32xf32>
    %85 = math.tanh %84 : vector<2x32xf32>
    %86 = arith.mulf %81, %85 : vector<2x32xf32>
    %87 = vector.extract_strided_slice %9 {offsets = [0, 1, 0], sizes = [2, 1, 32], strides = [1, 1, 1]} : vector<2x8x32xf32> to vector<2x1x32xf32>
    %88 = vector.shape_cast %87 : vector<2x1x32xf32> to vector<2x32xf32>
    %cst_53 = arith.constant dense<0.000000e+00> : vector<2x32xf32>
    %89 = tpu.matmul %86, %35, %cst_53 {dimension_numbers = #tpu.dot_dimension_numbers<[1], [0], [0], [1], [0, 0, 1, 1], [], []>} : vector<2x32xf32>, vector<32x32xf32>, vector<2x32xf32> -> vector<2x32xf32>
    %90 = arith.addf %88, %89 : vector<2x32xf32>
    %cst_54 = arith.constant 5.000000e-01 : f32
    %91 = vector.broadcast %cst_54 : f32 to vector<2x32xf32>
    %92 = arith.mulf %91, %90 : vector<2x32xf32>
    %93 = math.tanh %92 : vector<2x32xf32>
    %cst_55 = arith.constant 5.000000e-01 : f32
    %94 = vector.broadcast %cst_55 : f32 to vector<2x32xf32>
    %95 = arith.mulf %94, %93 : vector<2x32xf32>
    %cst_56 = arith.constant 5.000000e-01 : f32
    %96 = vector.broadcast %cst_56 : f32 to vector<2x32xf32>
    %97 = arith.addf %95, %96 : vector<2x32xf32>
    %98 = vector.extract_strided_slice %17 {offsets = [0, 1, 0], sizes = [2, 1, 32], strides = [1, 1, 1]} : vector<2x8x32xf32> to vector<2x1x32xf32>
    %99 = vector.shape_cast %98 : vector<2x1x32xf32> to vector<2x32xf32>
    %cst_57 = arith.constant dense<0.000000e+00> : vector<2x32xf32>
    %100 = tpu.matmul %86, %37, %cst_57 {dimension_numbers = #tpu.dot_dimension_numbers<[1], [0], [0], [1], [0, 0, 1, 1], [], []>} : vector<2x32xf32>, vector<32x32xf32>, vector<2x32xf32> -> vector<2x32xf32>
    %101 = arith.addf %99, %100 : vector<2x32xf32>
    %cst_58 = arith.constant 5.000000e-01 : f32
    %102 = vector.broadcast %cst_58 : f32 to vector<2x32xf32>
    %103 = arith.mulf %102, %101 : vector<2x32xf32>
    %104 = math.tanh %103 : vector<2x32xf32>
    %cst_59 = arith.constant 5.000000e-01 : f32
    %105 = vector.broadcast %cst_59 : f32 to vector<2x32xf32>
    %106 = arith.mulf %105, %104 : vector<2x32xf32>
    %cst_60 = arith.constant 5.000000e-01 : f32
    %107 = vector.broadcast %cst_60 : f32 to vector<2x32xf32>
    %108 = arith.addf %106, %107 : vector<2x32xf32>
    %109 = vector.extract_strided_slice %25 {offsets = [0, 1, 0], sizes = [2, 1, 32], strides = [1, 1, 1]} : vector<2x8x32xf32> to vector<2x1x32xf32>
    %110 = vector.shape_cast %109 : vector<2x1x32xf32> to vector<2x32xf32>
    %cst_61 = arith.constant dense<0.000000e+00> : vector<2x32xf32>
    %111 = tpu.matmul %86, %39, %cst_61 {dimension_numbers = #tpu.dot_dimension_numbers<[1], [0], [0], [1], [0, 0, 1, 1], [], []>} : vector<2x32xf32>, vector<32x32xf32>, vector<2x32xf32> -> vector<2x32xf32>
    %112 = arith.addf %110, %111 : vector<2x32xf32>
    %113 = math.tanh %112 : vector<2x32xf32>
    %114 = vector.extract_strided_slice %33 {offsets = [0, 1, 0], sizes = [2, 1, 32], strides = [1, 1, 1]} : vector<2x8x32xf32> to vector<2x1x32xf32>
    %115 = vector.shape_cast %114 : vector<2x1x32xf32> to vector<2x32xf32>
    %cst_62 = arith.constant dense<0.000000e+00> : vector<2x32xf32>
    %116 = tpu.matmul %86, %41, %cst_62 {dimension_numbers = #tpu.dot_dimension_numbers<[1], [0], [0], [1], [0, 0, 1, 1], [], []>} : vector<2x32xf32>, vector<32x32xf32>, vector<2x32xf32> -> vector<2x32xf32>
    %117 = arith.addf %115, %116 : vector<2x32xf32>
    %cst_63 = arith.constant 5.000000e-01 : f32
    %118 = vector.broadcast %cst_63 : f32 to vector<2x32xf32>
    %119 = arith.mulf %118, %117 : vector<2x32xf32>
    %120 = math.tanh %119 : vector<2x32xf32>
    %cst_64 = arith.constant 5.000000e-01 : f32
    %121 = vector.broadcast %cst_64 : f32 to vector<2x32xf32>
    %122 = arith.mulf %121, %120 : vector<2x32xf32>
    %cst_65 = arith.constant 5.000000e-01 : f32
    %123 = vector.broadcast %cst_65 : f32 to vector<2x32xf32>
    %124 = arith.addf %122, %123 : vector<2x32xf32>
    %125 = arith.mulf %108, %84 : vector<2x32xf32>
    %126 = arith.mulf %97, %113 : vector<2x32xf32>
    %127 = arith.addf %125, %126 : vector<2x32xf32>
    %128 = math.tanh %127 : vector<2x32xf32>
    %129 = arith.mulf %124, %128 : vector<2x32xf32>
    %130 = vector.extract_strided_slice %9 {offsets = [0, 2, 0], sizes = [2, 1, 32], strides = [1, 1, 1]} : vector<2x8x32xf32> to vector<2x1x32xf32>
    %131 = vector.shape_cast %130 : vector<2x1x32xf32> to vector<2x32xf32>
    %cst_66 = arith.constant dense<0.000000e+00> : vector<2x32xf32>
    %132 = tpu.matmul %129, %35, %cst_66 {dimension_numbers = #tpu.dot_dimension_numbers<[1], [0], [0], [1], [0, 0, 1, 1], [], []>} : vector<2x32xf32>, vector<32x32xf32>, vector<2x32xf32> -> vector<2x32xf32>
    %133 = arith.addf %131, %132 : vector<2x32xf32>
    %cst_67 = arith.constant 5.000000e-01 : f32
    %134 = vector.broadcast %cst_67 : f32 to vector<2x32xf32>
    %135 = arith.mulf %134, %133 : vector<2x32xf32>
    %136 = math.tanh %135 : vector<2x32xf32>
    %cst_68 = arith.constant 5.000000e-01 : f32
    %137 = vector.broadcast %cst_68 : f32 to vector<2x32xf32>
    %138 = arith.mulf %137, %136 : vector<2x32xf32>
    %cst_69 = arith.constant 5.000000e-01 : f32
    %139 = vector.broadcast %cst_69 : f32 to vector<2x32xf32>
    %140 = arith.addf %138, %139 : vector<2x32xf32>
    %141 = vector.extract_strided_slice %17 {offsets = [0, 2, 0], sizes = [2, 1, 32], strides = [1, 1, 1]} : vector<2x8x32xf32> to vector<2x1x32xf32>
    %142 = vector.shape_cast %141 : vector<2x1x32xf32> to vector<2x32xf32>
    %cst_70 = arith.constant dense<0.000000e+00> : vector<2x32xf32>
    %143 = tpu.matmul %129, %37, %cst_70 {dimension_numbers = #tpu.dot_dimension_numbers<[1], [0], [0], [1], [0, 0, 1, 1], [], []>} : vector<2x32xf32>, vector<32x32xf32>, vector<2x32xf32> -> vector<2x32xf32>
    %144 = arith.addf %142, %143 : vector<2x32xf32>
    %cst_71 = arith.constant 5.000000e-01 : f32
    %145 = vector.broadcast %cst_71 : f32 to vector<2x32xf32>
    %146 = arith.mulf %145, %144 : vector<2x32xf32>
    %147 = math.tanh %146 : vector<2x32xf32>
    %cst_72 = arith.constant 5.000000e-01 : f32
    %148 = vector.broadcast %cst_72 : f32 to vector<2x32xf32>
    %149 = arith.mulf %148, %147 : vector<2x32xf32>
    %cst_73 = arith.constant 5.000000e-01 : f32
    %150 = vector.broadcast %cst_73 : f32 to vector<2x32xf32>
    %151 = arith.addf %149, %150 : vector<2x32xf32>
    %152 = vector.extract_strided_slice %25 {offsets = [0, 2, 0], sizes = [2, 1, 32], strides = [1, 1, 1]} : vector<2x8x32xf32> to vector<2x1x32xf32>
    %153 = vector.shape_cast %152 : vector<2x1x32xf32> to vector<2x32xf32>
    %cst_74 = arith.constant dense<0.000000e+00> : vector<2x32xf32>
    %154 = tpu.matmul %129, %39, %cst_74 {dimension_numbers = #tpu.dot_dimension_numbers<[1], [0], [0], [1], [0, 0, 1, 1], [], []>} : vector<2x32xf32>, vector<32x32xf32>, vector<2x32xf32> -> vector<2x32xf32>
    %155 = arith.addf %153, %154 : vector<2x32xf32>
    %156 = math.tanh %155 : vector<2x32xf32>
    %157 = vector.extract_strided_slice %33 {offsets = [0, 2, 0], sizes = [2, 1, 32], strides = [1, 1, 1]} : vector<2x8x32xf32> to vector<2x1x32xf32>
    %158 = vector.shape_cast %157 : vector<2x1x32xf32> to vector<2x32xf32>
    %cst_75 = arith.constant dense<0.000000e+00> : vector<2x32xf32>
    %159 = tpu.matmul %129, %41, %cst_75 {dimension_numbers = #tpu.dot_dimension_numbers<[1], [0], [0], [1], [0, 0, 1, 1], [], []>} : vector<2x32xf32>, vector<32x32xf32>, vector<2x32xf32> -> vector<2x32xf32>
    %160 = arith.addf %158, %159 : vector<2x32xf32>
    %cst_76 = arith.constant 5.000000e-01 : f32
    %161 = vector.broadcast %cst_76 : f32 to vector<2x32xf32>
    %162 = arith.mulf %161, %160 : vector<2x32xf32>
    %163 = math.tanh %162 : vector<2x32xf32>
    %cst_77 = arith.constant 5.000000e-01 : f32
    %164 = vector.broadcast %cst_77 : f32 to vector<2x32xf32>
    %165 = arith.mulf %164, %163 : vector<2x32xf32>
    %cst_78 = arith.constant 5.000000e-01 : f32
    %166 = vector.broadcast %cst_78 : f32 to vector<2x32xf32>
    %167 = arith.addf %165, %166 : vector<2x32xf32>
    %168 = arith.mulf %151, %127 : vector<2x32xf32>
    %169 = arith.mulf %140, %156 : vector<2x32xf32>
    %170 = arith.addf %168, %169 : vector<2x32xf32>
    %171 = math.tanh %170 : vector<2x32xf32>
    %172 = arith.mulf %167, %171 : vector<2x32xf32>
    %173 = vector.extract_strided_slice %9 {offsets = [0, 3, 0], sizes = [2, 1, 32], strides = [1, 1, 1]} : vector<2x8x32xf32> to vector<2x1x32xf32>
    %174 = vector.shape_cast %173 : vector<2x1x32xf32> to vector<2x32xf32>
    %cst_79 = arith.constant dense<0.000000e+00> : vector<2x32xf32>
    %175 = tpu.matmul %172, %35, %cst_79 {dimension_numbers = #tpu.dot_dimension_numbers<[1], [0], [0], [1], [0, 0, 1, 1], [], []>} : vector<2x32xf32>, vector<32x32xf32>, vector<2x32xf32> -> vector<2x32xf32>
    %176 = arith.addf %174, %175 : vector<2x32xf32>
    %cst_80 = arith.constant 5.000000e-01 : f32
    %177 = vector.broadcast %cst_80 : f32 to vector<2x32xf32>
    %178 = arith.mulf %177, %176 : vector<2x32xf32>
    %179 = math.tanh %178 : vector<2x32xf32>
    %cst_81 = arith.constant 5.000000e-01 : f32
    %180 = vector.broadcast %cst_81 : f32 to vector<2x32xf32>
    %181 = arith.mulf %180, %179 : vector<2x32xf32>
    %cst_82 = arith.constant 5.000000e-01 : f32
    %182 = vector.broadcast %cst_82 : f32 to vector<2x32xf32>
    %183 = arith.addf %181, %182 : vector<2x32xf32>
    %184 = vector.extract_strided_slice %17 {offsets = [0, 3, 0], sizes = [2, 1, 32], strides = [1, 1, 1]} : vector<2x8x32xf32> to vector<2x1x32xf32>
    %185 = vector.shape_cast %184 : vector<2x1x32xf32> to vector<2x32xf32>
    %cst_83 = arith.constant dense<0.000000e+00> : vector<2x32xf32>
    %186 = tpu.matmul %172, %37, %cst_83 {dimension_numbers = #tpu.dot_dimension_numbers<[1], [0], [0], [1], [0, 0, 1, 1], [], []>} : vector<2x32xf32>, vector<32x32xf32>, vector<2x32xf32> -> vector<2x32xf32>
    %187 = arith.addf %185, %186 : vector<2x32xf32>
    %cst_84 = arith.constant 5.000000e-01 : f32
    %188 = vector.broadcast %cst_84 : f32 to vector<2x32xf32>
    %189 = arith.mulf %188, %187 : vector<2x32xf32>
    %190 = math.tanh %189 : vector<2x32xf32>
    %cst_85 = arith.constant 5.000000e-01 : f32
    %191 = vector.broadcast %cst_85 : f32 to vector<2x32xf32>
    %192 = arith.mulf %191, %190 : vector<2x32xf32>
    %cst_86 = arith.constant 5.000000e-01 : f32
    %193 = vector.broadcast %cst_86 : f32 to vector<2x32xf32>
    %194 = arith.addf %192, %193 : vector<2x32xf32>
    %195 = vector.extract_strided_slice %25 {offsets = [0, 3, 0], sizes = [2, 1, 32], strides = [1, 1, 1]} : vector<2x8x32xf32> to vector<2x1x32xf32>
    %196 = vector.shape_cast %195 : vector<2x1x32xf32> to vector<2x32xf32>
    %cst_87 = arith.constant dense<0.000000e+00> : vector<2x32xf32>
    %197 = tpu.matmul %172, %39, %cst_87 {dimension_numbers = #tpu.dot_dimension_numbers<[1], [0], [0], [1], [0, 0, 1, 1], [], []>} : vector<2x32xf32>, vector<32x32xf32>, vector<2x32xf32> -> vector<2x32xf32>
    %198 = arith.addf %196, %197 : vector<2x32xf32>
    %199 = math.tanh %198 : vector<2x32xf32>
    %200 = vector.extract_strided_slice %33 {offsets = [0, 3, 0], sizes = [2, 1, 32], strides = [1, 1, 1]} : vector<2x8x32xf32> to vector<2x1x32xf32>
    %201 = vector.shape_cast %200 : vector<2x1x32xf32> to vector<2x32xf32>
    %cst_88 = arith.constant dense<0.000000e+00> : vector<2x32xf32>
    %202 = tpu.matmul %172, %41, %cst_88 {dimension_numbers = #tpu.dot_dimension_numbers<[1], [0], [0], [1], [0, 0, 1, 1], [], []>} : vector<2x32xf32>, vector<32x32xf32>, vector<2x32xf32> -> vector<2x32xf32>
    %203 = arith.addf %201, %202 : vector<2x32xf32>
    %cst_89 = arith.constant 5.000000e-01 : f32
    %204 = vector.broadcast %cst_89 : f32 to vector<2x32xf32>
    %205 = arith.mulf %204, %203 : vector<2x32xf32>
    %206 = math.tanh %205 : vector<2x32xf32>
    %cst_90 = arith.constant 5.000000e-01 : f32
    %207 = vector.broadcast %cst_90 : f32 to vector<2x32xf32>
    %208 = arith.mulf %207, %206 : vector<2x32xf32>
    %cst_91 = arith.constant 5.000000e-01 : f32
    %209 = vector.broadcast %cst_91 : f32 to vector<2x32xf32>
    %210 = arith.addf %208, %209 : vector<2x32xf32>
    %211 = arith.mulf %194, %170 : vector<2x32xf32>
    %212 = arith.mulf %183, %199 : vector<2x32xf32>
    %213 = arith.addf %211, %212 : vector<2x32xf32>
    %214 = math.tanh %213 : vector<2x32xf32>
    %215 = arith.mulf %210, %214 : vector<2x32xf32>
    %216 = vector.extract_strided_slice %9 {offsets = [0, 4, 0], sizes = [2, 1, 32], strides = [1, 1, 1]} : vector<2x8x32xf32> to vector<2x1x32xf32>
    %217 = vector.shape_cast %216 : vector<2x1x32xf32> to vector<2x32xf32>
    %cst_92 = arith.constant dense<0.000000e+00> : vector<2x32xf32>
    %218 = tpu.matmul %215, %35, %cst_92 {dimension_numbers = #tpu.dot_dimension_numbers<[1], [0], [0], [1], [0, 0, 1, 1], [], []>} : vector<2x32xf32>, vector<32x32xf32>, vector<2x32xf32> -> vector<2x32xf32>
    %219 = arith.addf %217, %218 : vector<2x32xf32>
    %cst_93 = arith.constant 5.000000e-01 : f32
    %220 = vector.broadcast %cst_93 : f32 to vector<2x32xf32>
    %221 = arith.mulf %220, %219 : vector<2x32xf32>
    %222 = math.tanh %221 : vector<2x32xf32>
    %cst_94 = arith.constant 5.000000e-01 : f32
    %223 = vector.broadcast %cst_94 : f32 to vector<2x32xf32>
    %224 = arith.mulf %223, %222 : vector<2x32xf32>
    %cst_95 = arith.constant 5.000000e-01 : f32
    %225 = vector.broadcast %cst_95 : f32 to vector<2x32xf32>
    %226 = arith.addf %224, %225 : vector<2x32xf32>
    %227 = vector.extract_strided_slice %17 {offsets = [0, 4, 0], sizes = [2, 1, 32], strides = [1, 1, 1]} : vector<2x8x32xf32> to vector<2x1x32xf32>
    %228 = vector.shape_cast %227 : vector<2x1x32xf32> to vector<2x32xf32>
    %cst_96 = arith.constant dense<0.000000e+00> : vector<2x32xf32>
    %229 = tpu.matmul %215, %37, %cst_96 {dimension_numbers = #tpu.dot_dimension_numbers<[1], [0], [0], [1], [0, 0, 1, 1], [], []>} : vector<2x32xf32>, vector<32x32xf32>, vector<2x32xf32> -> vector<2x32xf32>
    %230 = arith.addf %228, %229 : vector<2x32xf32>
    %cst_97 = arith.constant 5.000000e-01 : f32
    %231 = vector.broadcast %cst_97 : f32 to vector<2x32xf32>
    %232 = arith.mulf %231, %230 : vector<2x32xf32>
    %233 = math.tanh %232 : vector<2x32xf32>
    %cst_98 = arith.constant 5.000000e-01 : f32
    %234 = vector.broadcast %cst_98 : f32 to vector<2x32xf32>
    %235 = arith.mulf %234, %233 : vector<2x32xf32>
    %cst_99 = arith.constant 5.000000e-01 : f32
    %236 = vector.broadcast %cst_99 : f32 to vector<2x32xf32>
    %237 = arith.addf %235, %236 : vector<2x32xf32>
    %238 = vector.extract_strided_slice %25 {offsets = [0, 4, 0], sizes = [2, 1, 32], strides = [1, 1, 1]} : vector<2x8x32xf32> to vector<2x1x32xf32>
    %239 = vector.shape_cast %238 : vector<2x1x32xf32> to vector<2x32xf32>
    %cst_100 = arith.constant dense<0.000000e+00> : vector<2x32xf32>
    %240 = tpu.matmul %215, %39, %cst_100 {dimension_numbers = #tpu.dot_dimension_numbers<[1], [0], [0], [1], [0, 0, 1, 1], [], []>} : vector<2x32xf32>, vector<32x32xf32>, vector<2x32xf32> -> vector<2x32xf32>
    %241 = arith.addf %239, %240 : vector<2x32xf32>
    %242 = math.tanh %241 : vector<2x32xf32>
    %243 = vector.extract_strided_slice %33 {offsets = [0, 4, 0], sizes = [2, 1, 32], strides = [1, 1, 1]} : vector<2x8x32xf32> to vector<2x1x32xf32>
    %244 = vector.shape_cast %243 : vector<2x1x32xf32> to vector<2x32xf32>
    %cst_101 = arith.constant dense<0.000000e+00> : vector<2x32xf32>
    %245 = tpu.matmul %215, %41, %cst_101 {dimension_numbers = #tpu.dot_dimension_numbers<[1], [0], [0], [1], [0, 0, 1, 1], [], []>} : vector<2x32xf32>, vector<32x32xf32>, vector<2x32xf32> -> vector<2x32xf32>
    %246 = arith.addf %244, %245 : vector<2x32xf32>
    %cst_102 = arith.constant 5.000000e-01 : f32
    %247 = vector.broadcast %cst_102 : f32 to vector<2x32xf32>
    %248 = arith.mulf %247, %246 : vector<2x32xf32>
    %249 = math.tanh %248 : vector<2x32xf32>
    %cst_103 = arith.constant 5.000000e-01 : f32
    %250 = vector.broadcast %cst_103 : f32 to vector<2x32xf32>
    %251 = arith.mulf %250, %249 : vector<2x32xf32>
    %cst_104 = arith.constant 5.000000e-01 : f32
    %252 = vector.broadcast %cst_104 : f32 to vector<2x32xf32>
    %253 = arith.addf %251, %252 : vector<2x32xf32>
    %254 = arith.mulf %237, %213 : vector<2x32xf32>
    %255 = arith.mulf %226, %242 : vector<2x32xf32>
    %256 = arith.addf %254, %255 : vector<2x32xf32>
    %257 = math.tanh %256 : vector<2x32xf32>
    %258 = arith.mulf %253, %257 : vector<2x32xf32>
    %259 = vector.extract_strided_slice %9 {offsets = [0, 5, 0], sizes = [2, 1, 32], strides = [1, 1, 1]} : vector<2x8x32xf32> to vector<2x1x32xf32>
    %260 = vector.shape_cast %259 : vector<2x1x32xf32> to vector<2x32xf32>
    %cst_105 = arith.constant dense<0.000000e+00> : vector<2x32xf32>
    %261 = tpu.matmul %258, %35, %cst_105 {dimension_numbers = #tpu.dot_dimension_numbers<[1], [0], [0], [1], [0, 0, 1, 1], [], []>} : vector<2x32xf32>, vector<32x32xf32>, vector<2x32xf32> -> vector<2x32xf32>
    %262 = arith.addf %260, %261 : vector<2x32xf32>
    %cst_106 = arith.constant 5.000000e-01 : f32
    %263 = vector.broadcast %cst_106 : f32 to vector<2x32xf32>
    %264 = arith.mulf %263, %262 : vector<2x32xf32>
    %265 = math.tanh %264 : vector<2x32xf32>
    %cst_107 = arith.constant 5.000000e-01 : f32
    %266 = vector.broadcast %cst_107 : f32 to vector<2x32xf32>
    %267 = arith.mulf %266, %265 : vector<2x32xf32>
    %cst_108 = arith.constant 5.000000e-01 : f32
    %268 = vector.broadcast %cst_108 : f32 to vector<2x32xf32>
    %269 = arith.addf %267, %268 : vector<2x32xf32>
    %270 = vector.extract_strided_slice %17 {offsets = [0, 5, 0], sizes = [2, 1, 32], strides = [1, 1, 1]} : vector<2x8x32xf32> to vector<2x1x32xf32>
    %271 = vector.shape_cast %270 : vector<2x1x32xf32> to vector<2x32xf32>
    %cst_109 = arith.constant dense<0.000000e+00> : vector<2x32xf32>
    %272 = tpu.matmul %258, %37, %cst_109 {dimension_numbers = #tpu.dot_dimension_numbers<[1], [0], [0], [1], [0, 0, 1, 1], [], []>} : vector<2x32xf32>, vector<32x32xf32>, vector<2x32xf32> -> vector<2x32xf32>
    %273 = arith.addf %271, %272 : vector<2x32xf32>
    %cst_110 = arith.constant 5.000000e-01 : f32
    %274 = vector.broadcast %cst_110 : f32 to vector<2x32xf32>
    %275 = arith.mulf %274, %273 : vector<2x32xf32>
    %276 = math.tanh %275 : vector<2x32xf32>
    %cst_111 = arith.constant 5.000000e-01 : f32
    %277 = vector.broadcast %cst_111 : f32 to vector<2x32xf32>
    %278 = arith.mulf %277, %276 : vector<2x32xf32>
    %cst_112 = arith.constant 5.000000e-01 : f32
    %279 = vector.broadcast %cst_112 : f32 to vector<2x32xf32>
    %280 = arith.addf %278, %279 : vector<2x32xf32>
    %281 = vector.extract_strided_slice %25 {offsets = [0, 5, 0], sizes = [2, 1, 32], strides = [1, 1, 1]} : vector<2x8x32xf32> to vector<2x1x32xf32>
    %282 = vector.shape_cast %281 : vector<2x1x32xf32> to vector<2x32xf32>
    %cst_113 = arith.constant dense<0.000000e+00> : vector<2x32xf32>
    %283 = tpu.matmul %258, %39, %cst_113 {dimension_numbers = #tpu.dot_dimension_numbers<[1], [0], [0], [1], [0, 0, 1, 1], [], []>} : vector<2x32xf32>, vector<32x32xf32>, vector<2x32xf32> -> vector<2x32xf32>
    %284 = arith.addf %282, %283 : vector<2x32xf32>
    %285 = math.tanh %284 : vector<2x32xf32>
    %286 = vector.extract_strided_slice %33 {offsets = [0, 5, 0], sizes = [2, 1, 32], strides = [1, 1, 1]} : vector<2x8x32xf32> to vector<2x1x32xf32>
    %287 = vector.shape_cast %286 : vector<2x1x32xf32> to vector<2x32xf32>
    %cst_114 = arith.constant dense<0.000000e+00> : vector<2x32xf32>
    %288 = tpu.matmul %258, %41, %cst_114 {dimension_numbers = #tpu.dot_dimension_numbers<[1], [0], [0], [1], [0, 0, 1, 1], [], []>} : vector<2x32xf32>, vector<32x32xf32>, vector<2x32xf32> -> vector<2x32xf32>
    %289 = arith.addf %287, %288 : vector<2x32xf32>
    %cst_115 = arith.constant 5.000000e-01 : f32
    %290 = vector.broadcast %cst_115 : f32 to vector<2x32xf32>
    %291 = arith.mulf %290, %289 : vector<2x32xf32>
    %292 = math.tanh %291 : vector<2x32xf32>
    %cst_116 = arith.constant 5.000000e-01 : f32
    %293 = vector.broadcast %cst_116 : f32 to vector<2x32xf32>
    %294 = arith.mulf %293, %292 : vector<2x32xf32>
    %cst_117 = arith.constant 5.000000e-01 : f32
    %295 = vector.broadcast %cst_117 : f32 to vector<2x32xf32>
    %296 = arith.addf %294, %295 : vector<2x32xf32>
    %297 = arith.mulf %280, %256 : vector<2x32xf32>
    %298 = arith.mulf %269, %285 : vector<2x32xf32>
    %299 = arith.addf %297, %298 : vector<2x32xf32>
    %300 = math.tanh %299 : vector<2x32xf32>
    %301 = arith.mulf %296, %300 : vector<2x32xf32>
    %302 = vector.extract_strided_slice %9 {offsets = [0, 6, 0], sizes = [2, 1, 32], strides = [1, 1, 1]} : vector<2x8x32xf32> to vector<2x1x32xf32>
    %303 = vector.shape_cast %302 : vector<2x1x32xf32> to vector<2x32xf32>
    %cst_118 = arith.constant dense<0.000000e+00> : vector<2x32xf32>
    %304 = tpu.matmul %301, %35, %cst_118 {dimension_numbers = #tpu.dot_dimension_numbers<[1], [0], [0], [1], [0, 0, 1, 1], [], []>} : vector<2x32xf32>, vector<32x32xf32>, vector<2x32xf32> -> vector<2x32xf32>
    %305 = arith.addf %303, %304 : vector<2x32xf32>
    %cst_119 = arith.constant 5.000000e-01 : f32
    %306 = vector.broadcast %cst_119 : f32 to vector<2x32xf32>
    %307 = arith.mulf %306, %305 : vector<2x32xf32>
    %308 = math.tanh %307 : vector<2x32xf32>
    %cst_120 = arith.constant 5.000000e-01 : f32
    %309 = vector.broadcast %cst_120 : f32 to vector<2x32xf32>
    %310 = arith.mulf %309, %308 : vector<2x32xf32>
    %cst_121 = arith.constant 5.000000e-01 : f32
    %311 = vector.broadcast %cst_121 : f32 to vector<2x32xf32>
    %312 = arith.addf %310, %311 : vector<2x32xf32>
    %313 = vector.extract_strided_slice %17 {offsets = [0, 6, 0], sizes = [2, 1, 32], strides = [1, 1, 1]} : vector<2x8x32xf32> to vector<2x1x32xf32>
    %314 = vector.shape_cast %313 : vector<2x1x32xf32> to vector<2x32xf32>
    %cst_122 = arith.constant dense<0.000000e+00> : vector<2x32xf32>
    %315 = tpu.matmul %301, %37, %cst_122 {dimension_numbers = #tpu.dot_dimension_numbers<[1], [0], [0], [1], [0, 0, 1, 1], [], []>} : vector<2x32xf32>, vector<32x32xf32>, vector<2x32xf32> -> vector<2x32xf32>
    %316 = arith.addf %314, %315 : vector<2x32xf32>
    %cst_123 = arith.constant 5.000000e-01 : f32
    %317 = vector.broadcast %cst_123 : f32 to vector<2x32xf32>
    %318 = arith.mulf %317, %316 : vector<2x32xf32>
    %319 = math.tanh %318 : vector<2x32xf32>
    %cst_124 = arith.constant 5.000000e-01 : f32
    %320 = vector.broadcast %cst_124 : f32 to vector<2x32xf32>
    %321 = arith.mulf %320, %319 : vector<2x32xf32>
    %cst_125 = arith.constant 5.000000e-01 : f32
    %322 = vector.broadcast %cst_125 : f32 to vector<2x32xf32>
    %323 = arith.addf %321, %322 : vector<2x32xf32>
    %324 = vector.extract_strided_slice %25 {offsets = [0, 6, 0], sizes = [2, 1, 32], strides = [1, 1, 1]} : vector<2x8x32xf32> to vector<2x1x32xf32>
    %325 = vector.shape_cast %324 : vector<2x1x32xf32> to vector<2x32xf32>
    %cst_126 = arith.constant dense<0.000000e+00> : vector<2x32xf32>
    %326 = tpu.matmul %301, %39, %cst_126 {dimension_numbers = #tpu.dot_dimension_numbers<[1], [0], [0], [1], [0, 0, 1, 1], [], []>} : vector<2x32xf32>, vector<32x32xf32>, vector<2x32xf32> -> vector<2x32xf32>
    %327 = arith.addf %325, %326 : vector<2x32xf32>
    %328 = math.tanh %327 : vector<2x32xf32>
    %329 = vector.extract_strided_slice %33 {offsets = [0, 6, 0], sizes = [2, 1, 32], strides = [1, 1, 1]} : vector<2x8x32xf32> to vector<2x1x32xf32>
    %330 = vector.shape_cast %329 : vector<2x1x32xf32> to vector<2x32xf32>
    %cst_127 = arith.constant dense<0.000000e+00> : vector<2x32xf32>
    %331 = tpu.matmul %301, %41, %cst_127 {dimension_numbers = #tpu.dot_dimension_numbers<[1], [0], [0], [1], [0, 0, 1, 1], [], []>} : vector<2x32xf32>, vector<32x32xf32>, vector<2x32xf32> -> vector<2x32xf32>
    %332 = arith.addf %330, %331 : vector<2x32xf32>
    %cst_128 = arith.constant 5.000000e-01 : f32
    %333 = vector.broadcast %cst_128 : f32 to vector<2x32xf32>
    %334 = arith.mulf %333, %332 : vector<2x32xf32>
    %335 = math.tanh %334 : vector<2x32xf32>
    %cst_129 = arith.constant 5.000000e-01 : f32
    %336 = vector.broadcast %cst_129 : f32 to vector<2x32xf32>
    %337 = arith.mulf %336, %335 : vector<2x32xf32>
    %cst_130 = arith.constant 5.000000e-01 : f32
    %338 = vector.broadcast %cst_130 : f32 to vector<2x32xf32>
    %339 = arith.addf %337, %338 : vector<2x32xf32>
    %340 = arith.mulf %323, %299 : vector<2x32xf32>
    %341 = arith.mulf %312, %328 : vector<2x32xf32>
    %342 = arith.addf %340, %341 : vector<2x32xf32>
    %343 = math.tanh %342 : vector<2x32xf32>
    %344 = arith.mulf %339, %343 : vector<2x32xf32>
    %345 = vector.extract_strided_slice %9 {offsets = [0, 7, 0], sizes = [2, 1, 32], strides = [1, 1, 1]} : vector<2x8x32xf32> to vector<2x1x32xf32>
    %346 = vector.shape_cast %345 : vector<2x1x32xf32> to vector<2x32xf32>
    %cst_131 = arith.constant dense<0.000000e+00> : vector<2x32xf32>
    %347 = tpu.matmul %344, %35, %cst_131 {dimension_numbers = #tpu.dot_dimension_numbers<[1], [0], [0], [1], [0, 0, 1, 1], [], []>} : vector<2x32xf32>, vector<32x32xf32>, vector<2x32xf32> -> vector<2x32xf32>
    %348 = arith.addf %346, %347 : vector<2x32xf32>
    %cst_132 = arith.constant 5.000000e-01 : f32
    %349 = vector.broadcast %cst_132 : f32 to vector<2x32xf32>
    %350 = arith.mulf %349, %348 : vector<2x32xf32>
    %351 = math.tanh %350 : vector<2x32xf32>
    %cst_133 = arith.constant 5.000000e-01 : f32
    %352 = vector.broadcast %cst_133 : f32 to vector<2x32xf32>
    %353 = arith.mulf %352, %351 : vector<2x32xf32>
    %cst_134 = arith.constant 5.000000e-01 : f32
    %354 = vector.broadcast %cst_134 : f32 to vector<2x32xf32>
    %355 = arith.addf %353, %354 : vector<2x32xf32>
    %356 = vector.extract_strided_slice %17 {offsets = [0, 7, 0], sizes = [2, 1, 32], strides = [1, 1, 1]} : vector<2x8x32xf32> to vector<2x1x32xf32>
    %357 = vector.shape_cast %356 : vector<2x1x32xf32> to vector<2x32xf32>
    %cst_135 = arith.constant dense<0.000000e+00> : vector<2x32xf32>
    %358 = tpu.matmul %344, %37, %cst_135 {dimension_numbers = #tpu.dot_dimension_numbers<[1], [0], [0], [1], [0, 0, 1, 1], [], []>} : vector<2x32xf32>, vector<32x32xf32>, vector<2x32xf32> -> vector<2x32xf32>
    %359 = arith.addf %357, %358 : vector<2x32xf32>
    %cst_136 = arith.constant 5.000000e-01 : f32
    %360 = vector.broadcast %cst_136 : f32 to vector<2x32xf32>
    %361 = arith.mulf %360, %359 : vector<2x32xf32>
    %362 = math.tanh %361 : vector<2x32xf32>
    %cst_137 = arith.constant 5.000000e-01 : f32
    %363 = vector.broadcast %cst_137 : f32 to vector<2x32xf32>
    %364 = arith.mulf %363, %362 : vector<2x32xf32>
    %cst_138 = arith.constant 5.000000e-01 : f32
    %365 = vector.broadcast %cst_138 : f32 to vector<2x32xf32>
    %366 = arith.addf %364, %365 : vector<2x32xf32>
    %367 = vector.extract_strided_slice %25 {offsets = [0, 7, 0], sizes = [2, 1, 32], strides = [1, 1, 1]} : vector<2x8x32xf32> to vector<2x1x32xf32>
    %368 = vector.shape_cast %367 : vector<2x1x32xf32> to vector<2x32xf32>
    %cst_139 = arith.constant dense<0.000000e+00> : vector<2x32xf32>
    %369 = tpu.matmul %344, %39, %cst_139 {dimension_numbers = #tpu.dot_dimension_numbers<[1], [0], [0], [1], [0, 0, 1, 1], [], []>} : vector<2x32xf32>, vector<32x32xf32>, vector<2x32xf32> -> vector<2x32xf32>
    %370 = arith.addf %368, %369 : vector<2x32xf32>
    %371 = math.tanh %370 : vector<2x32xf32>
    %372 = vector.extract_strided_slice %33 {offsets = [0, 7, 0], sizes = [2, 1, 32], strides = [1, 1, 1]} : vector<2x8x32xf32> to vector<2x1x32xf32>
    %373 = vector.shape_cast %372 : vector<2x1x32xf32> to vector<2x32xf32>
    %cst_140 = arith.constant dense<0.000000e+00> : vector<2x32xf32>
    %374 = tpu.matmul %344, %41, %cst_140 {dimension_numbers = #tpu.dot_dimension_numbers<[1], [0], [0], [1], [0, 0, 1, 1], [], []>} : vector<2x32xf32>, vector<32x32xf32>, vector<2x32xf32> -> vector<2x32xf32>
    %375 = arith.addf %373, %374 : vector<2x32xf32>
    %cst_141 = arith.constant 5.000000e-01 : f32
    %376 = vector.broadcast %cst_141 : f32 to vector<2x32xf32>
    %377 = arith.mulf %376, %375 : vector<2x32xf32>
    %378 = math.tanh %377 : vector<2x32xf32>
    %cst_142 = arith.constant 5.000000e-01 : f32
    %379 = vector.broadcast %cst_142 : f32 to vector<2x32xf32>
    %380 = arith.mulf %379, %378 : vector<2x32xf32>
    %cst_143 = arith.constant 5.000000e-01 : f32
    %381 = vector.broadcast %cst_143 : f32 to vector<2x32xf32>
    %382 = arith.addf %380, %381 : vector<2x32xf32>
    %383 = arith.mulf %366, %342 : vector<2x32xf32>
    %384 = arith.mulf %355, %371 : vector<2x32xf32>
    %385 = arith.addf %383, %384 : vector<2x32xf32>
    %386 = math.tanh %385 : vector<2x32xf32>
    %387 = arith.mulf %382, %386 : vector<2x32xf32>
    %c0_144 = arith.constant 0 : index
    %c0_145 = arith.constant 0 : index
    %388 = vector.load %arg5[%c0_144, %c0_145] : memref<32x128xf32, #tpu.memory_space<vmem>>, vector<32x128xf32>
    %cst_146 = arith.constant dense<0.000000e+00> : vector<2x128xf32>
    %389 = tpu.matmul %387, %388, %cst_146 {dimension_numbers = #tpu.dot_dimension_numbers<[1], [0], [0], [1], [0, 0, 1, 1], [], []>} : vector<2x32xf32>, vector<32x128xf32>, vector<2x128xf32> -> vector<2x128xf32>
    %c0_147 = arith.constant 0 : index
    %c0_148 = arith.constant 0 : index
    %390 = vector.load %arg6[%c0_147, %c0_148] : memref<1x128xf32, #tpu.memory_space<vmem>>, vector<1x128xf32>
    %391 = vector.broadcast %390 : vector<1x128xf32> to vector<2x128xf32>
    %392 = arith.addf %389, %391 : vector<2x128xf32>
    %c0_149 = arith.constant 0 : index
    %c0_150 = arith.constant 0 : index
    %393 = vector.load %arg7[%c0_149, %c0_150] : memref<2x128xf32, #tpu.memory_space<vmem>>, vector<2x128xf32>
    tpu.vector_store %arg7[%c0_149, %c0_150], %392 {strides = array<i32>} : memref<2x128xf32, #tpu.memory_space<vmem>>, vector<2x128xf32>,
    return
  }
  func.func @transform_0(%arg0: i32) -> (i32, i32, i32) {
    %c0_i32 = arith.constant 0 : i32
    %c0_i32_0 = arith.constant 0 : i32
    %c0_i32_1 = arith.constant 0 : i32
    return %arg0, %c0_i32, %c0_i32_0 : i32, i32, i32
  }
  func.func @transform_1(%arg0: i32) -> (i32, i32, i32) {
    %c0_i32 = arith.constant 0 : i32
    %c0_i32_0 = arith.constant 0 : i32
    %c0_i32_1 = arith.constant 0 : i32
    %c0_i32_2 = arith.constant 0 : i32
    return %c0_i32, %c0_i32_0, %c0_i32_1 : i32, i32, i32
  }
  func.func @transform_2(%arg0: i32) -> (i32, i32, i32) {
    %c0_i32 = arith.constant 0 : i32
    %c0_i32_0 = arith.constant 0 : i32
    %c0_i32_1 = arith.constant 0 : i32
    %c0_i32_2 = arith.constant 0 : i32
    return %c0_i32, %c0_i32_0, %c0_i32_1 : i32, i32, i32
  }
  func.func @transform_3(%arg0: i32) -> (i32, i32, i32) {
    %c0_i32 = arith.constant 0 : i32
    %c0_i32_0 = arith.constant 0 : i32
    %c0_i32_1 = arith.constant 0 : i32
    %c0_i32_2 = arith.constant 0 : i32
    return %c0_i32, %c0_i32_0, %c0_i32_1 : i32, i32, i32
  }
  func.func @transform_4(%arg0: i32) -> (i32, i32) {
    %c0_i32 = arith.constant 0 : i32
    %c0_i32_0 = arith.constant 0 : i32
    %c0_i32_1 = arith.constant 0 : i32
    return %c0_i32, %c0_i32_0 : i32, i32
  }
  func.func @transform_5(%arg0: i32) -> (i32, i32) {
    %c0_i32 = arith.constant 0 : i32
    %c0_i32_0 = arith.constant 0 : i32
    %c0_i32_1 = arith.constant 0 : i32
    return %c0_i32, %c0_i32_0 : i32, i32
  }
  func.func @transform_6(%arg0: i32) -> (i32, i32) {
    %c0_i32 = arith.constant 0 : i32
    %c0_i32_0 = arith.constant 0 : i32
    return %arg0, %c0_i32 : i32, i32
  }
}

</mosaic_0001>

<bundles_post_ra>
// kernel: tpu_custom_call.1
= control target key start
LH: loop header
LB: loop body
LE: loop exit
PB: predicated region body
PF: predicated region fallthrough
CT: control target
= control target key end

     0   :  { %11 = vsyncpa [#allocation3], 0  ;;  %s2227_s0 = inlined_call_operand.vmem [shape: f32[2,8,4], index: 0, kind: input, shape index: {}]   ;;  %s2228_s1 = inlined_call_operand.vmem [shape: f32[4,4,32], index: 1, kind: input, shape index: {}]   ;;  %s2229_s2 = inlined_call_operand.hbm [shape: f32[4,32,32], index: 2, kind: input, shape index: {}]   ;;  %s2230_s3 = inlined_call_operand.vmem [shape: f32[4,1,32], index: 3, kind: input, shape index: {}]   ;;  %s2231_s4 = inlined_call_operand.hbm [shape: f32[32,128], index: 4, kind: input, shape index: {}]   ;;  %s2232_s5 = inlined_call_operand.vmem [shape: f32[1,128], index: 5, kind: input, shape index: {}]   ;;  %s2233_s6 = inlined_call_operand.hbm [shape: f32[2,128], index: 6, kind: output, shape index: {}]  }
   0x1   :  { %12 = vsyncpa [#allocation6], 0 }
   0x2   :  { %13 = vsyncpa [#allocation4], 0  ;;  %s22_s23 = sshll.u32 %s2229_s2, 4  ;;  %s1815_s24 = smov [#allocation2]   ;;  %s23_s23 = int_to_ptr.hbm [resolvable:$true] %s22_s23 }
   0x3   :  { %s24_s25 = sshll.u32 %s1815_s24, 4  ;;  %s37_s28 = sshll.u32 %s2231_s4, 4  ;;  %s25_s25 = int_to_ptr.vmem [resolvable:$true] %s24_s25  ;;  %s38_s28 = int_to_ptr.hbm [resolvable:$true] %s37_s28 }
   0x4   :  { %s1816_s29 = smov 128   ;;  %s1817_s30 = smov 8  }
   0x5   :  { %30 = dma.hbm_to_vmem [thread:$0]  %s23_s23, 2048, %s25_s25, [#allocation3], %s1816_s29, %s1816_s29, %s1817_s30  }
   0x6   :  { %s1818_s7 = smov [#allocation5]  }
   0x7   :  { %s39_s8 = sshll.u32 %s1818_s7, 4  ;;  %s40_s8 = int_to_ptr.vmem [resolvable:$true] %s39_s8 }
   0x8   :  { %45 = dma.hbm_to_vmem [thread:$0]  %s38_s28, 512, %s40_s8, [#allocation6], %s1816_s29, %s1816_s29, %s1817_s30  }
   0x9   :  { %1809 = dma.done.wait [#allocation3], 2048  }
   0xa   :  { %1810 = vsyncadd [#allocation3], 4294965248 }
   0xb   :  { %1811 = dma.done.wait [#allocation6], 512  }
   0xc   :  { %1812 = vsyncadd [#allocation6], 4294966784  ;;  %vm70_vm0 = vcmask 1043456   ;;  %vm63_vm1 = vcmask 31744   ;;  %v58_v0 = vld [vmem:[%s2228_s1] sm:$0xf] }
   0xd   :  { %v1510_v1 = vld [vmem:[%s2228_s1 + $0x4] sm:$0xf]  ;;  %v1515_v2 = vld [vmem:[%s2228_s1 + $0x8] sm:$0xf]  ;;  %1507 = vmatpush.msk.msra.mxu0 %vm70_vm0, %v58_v0  ;;  %v1520_v3 = vld [vmem:[%s2228_s1 + $0xc] sm:$0xf] }
   0xe   :  { %1512 = vmatpush.msk.msra.mxu1 %vm70_vm0, %v1510_v1  ;;  %v56_v4 = vld [vmem:[%s2227_s0] sm:$0xff]  ;;  %1517 = vmatpush.msk.msra.mxu2 %vm70_vm0, %v1515_v2  ;;  %v1877_v5 = vld [vmem:[#allocation2 + $0x18] sm:$0xff]  ;;  %v1889_v9 = vld [vmem:[#allocation2 + $0x10] sm:$0xff]  ;;  %v1819_v22 = vmov 0.0   ;;  %vm362_vm2 = vcmask 1041409   ;;  %vm215_vm3 = vcmask 261120  }
   0xf   :  { %1522 = vmatpush.msk.msra.mxu3 %vm70_vm0, %v1520_v3  ;;  %v1879_v6 = vld [vmem:[#allocation2 + $0x38] sm:$0xff]  ;;  %1508 = vmatmul.msk.f32.vlgmr.msra.gmra.mxu0 %vm63_vm1, %v56_v4  ;;  %v1891_v10 = vld [vmem:[#allocation2 + $0x30] sm:$0xff]  ;;  %v57_v13 = vld [vmem:[%s2227_s0 + $0x8] sm:$0xff]  ;;  %s1820_s26 = smov [#allocation7]   ;;  %s1496_s30 = sshll.u32 %s2233_s6, 4  ;;  %s1497_s30 = int_to_ptr.hbm [resolvable:$true] %s1496_s30 }
  0x10   :  { %1513 = vmatmul.msk.f32.vlgmr.msra.gmra.mxu1 %vm63_vm1, %v56_v4  ;;  %v1883_v7 = vld [vmem:[#allocation2 + $0x58] sm:$0xff]  ;;  %1518 = vmatmul.msk.f32.vlgmr.msra.gmra.mxu2 %vm63_vm1, %v56_v4  ;;  %v1895_v11 = vld [vmem:[#allocation2 + $0x50] sm:$0xff]  ;;  %v1904_v14 = vld [vmem:[#allocation2 + $0x8] sm:$0xff]  ;;  %s1494_s27 = sshll.u32 %s1820_s26, 4  ;;  %s1495_s27 = int_to_ptr.vmem [resolvable:$true] %s1494_s27 }
  0x11   :  { %v1885_v8 = vld [vmem:[#allocation2 + $0x78] sm:$0xff]  ;;  %1523 = vmatmul.msk.f32.vlgmr.msra.gmra.mxu3 %vm63_vm1, %v56_v4  ;;  %231 = vmatpush.msrb.mxu0 %v1877_v5  ;;  %v1897_v12 = vld [vmem:[#allocation2 + $0x70] sm:$0xff]  ;;  %v1906_v15 = vld [vmem:[#allocation2 + $0x28] sm:$0xff] }
  0x12   :  { %265 = vmatpush.msrb.mxu1 %v1879_v6  ;;  %299 = vmatpush.msrb.mxu2 %v1883_v7  ;;  %v1910_v16 = vld [vmem:[#allocation2 + $0x48] sm:$0xff]  ;;  %v1919_v18 = vld [vmem:[#allocation2] sm:$0xff] }
  0x13   :  { %327 = vmatpush.msrb.mxu3 %v1885_v8  ;;  %232 = vmatpush.msrb.mxu0 %v1889_v9  ;;  %v1912_v17 = vld [vmem:[#allocation2 + $0x68] sm:$0xff]  ;;  %v1921_v19 = vld [vmem:[#allocation2 + $0x20] sm:$0xff] }
  0x14   :  { %266 = vmatpush.msrb.mxu1 %v1891_v10  ;;  %300 = vmatpush.msrb.mxu2 %v1895_v11  ;;  %v1926_v20 = vld [vmem:[#allocation2 + $0x40] sm:$0xff] }
  0x15   :  { %328 = vmatpush.msrb.mxu3 %v1897_v12  ;;  %233 = vmatpush.msrb.mxu0 %v1904_v14  ;;  %v1928_v21 = vld [vmem:[#allocation2 + $0x60] sm:$0xff] }
  0x16   :  { %267 = vmatpush.msrb.mxu1 %v1906_v15  ;;  %301 = vmatpush.msrb.mxu2 %v1910_v16  ;;  %v1560_v29 = vld [vmem:[%s2230_s3] ss:$0 sm:$0xff]  ;;  %v1561_v30 = vld [vmem:[%s2230_s3 + $0x1] ss:$0 sm:$0xff]  ;;  %v1562_v43 = vld [vmem:[%s2230_s3 + $0x2] ss:$0 sm:$0xff] }
  0x17   :  { %329 = vmatpush.msrb.mxu3 %v1912_v17  ;;  %1509 = vmatmul.msk.f32.gmra.mxu0 %vm63_vm1, %v57_v13  ;;  %v1563_v44 = vld [vmem:[%s2230_s3 + $0x3] ss:$0 sm:$0xff] }
  0x18   :  { %1514 = vmatmul.msk.f32.gmra.mxu1 %vm63_vm1, %v57_v13  ;;  %1519 = vmatmul.msk.f32.gmra.mxu2 %vm63_vm1, %v57_v13 }
  0x19   :  { %1524 = vmatmul.msk.f32.gmra.mxu3 %vm63_vm1, %v57_v13  ;;  %234 = vmatpush.msrb.mxu0 %v1919_v18 }
  0x1a   :  { %268 = vmatpush.msrb.mxu1 %v1921_v19  ;;  %302 = vmatpush.msrb.mxu2 %v1926_v20 }
  0x1b   :  { %330 = vmatpush.msrb.mxu3 %v1928_v21  ;;  %378 = vmatpush.msra.mxu0 %v1877_v5 }
  0x1c   :  { %412 = vmatpush.msra.mxu1 %v1879_v6  ;;  %446 = vmatpush.msra.mxu2 %v1883_v7 }
  0x1d   :  { %474 = vmatpush.msra.mxu3 %v1885_v8  ;;  %379 = vmatpush.msra.mxu0 %v1889_v9 }
  0x1e   :  { %413 = vmatpush.msra.mxu1 %v1891_v10  ;;  %447 = vmatpush.msra.mxu2 %v1895_v11 }
  0x1f   :  { %475 = vmatpush.msra.mxu3 %v1897_v12  ;;  %235 = vmatmul.f32.vlgmr.msrb.gmra.mxu0 %v1819_v22 }
  0x20   :  { %269 = vmatmul.f32.vlgmr.msrb.gmra.mxu1 %v1819_v22  ;;  %303 = vmatmul.f32.vlgmr.msrb.gmra.mxu2 %v1819_v22 }
  0x21   :  { %331 = vmatmul.f32.vlgmr.msrb.gmra.mxu3 %v1819_v22  ;;  %380 = vmatpush.msra.mxu0 %v1904_v14 }
  0x22   :  { %414 = vmatpush.msra.mxu1 %v1906_v15  ;;  %448 = vmatpush.msra.mxu2 %v1910_v16 }
  0x23   :  { %476 = vmatpush.msra.mxu3 %v1912_v17  ;;  %381 = vmatpush.msra.mxu0 %v1919_v18 }
  0x24   :  { %415 = vmatpush.msra.mxu1 %v1921_v19  ;;  %449 = vmatpush.msra.mxu2 %v1926_v20 }
  0x25   :  { %477 = vmatpush.msra.mxu3 %v1928_v21  ;;  %530 = vmatpush.msrb.mxu0 %v1877_v5 }
  0x26   :  { %565 = vmatpush.msrb.mxu1 %v1879_v6  ;;  %600 = vmatpush.msrb.mxu2 %v1883_v7 }
  0x27   :  { %629 = vmatpush.msrb.mxu3 %v1885_v8  ;;  %531 = vmatpush.msrb.mxu0 %v1889_v9 }
  0x28   :  { %566 = vmatpush.msrb.mxu1 %v1891_v10  ;;  %601 = vmatpush.msrb.mxu2 %v1895_v11 }
  0x29   :  { %630 = vmatpush.msrb.mxu3 %v1897_v12  ;;  %532 = vmatpush.msrb.mxu0 %v1904_v14 }
  0x2a   :  { %567 = vmatpush.msrb.mxu1 %v1906_v15  ;;  %602 = vmatpush.msrb.mxu2 %v1910_v16 }
  0x2b   :  { %631 = vmatpush.msrb.mxu3 %v1912_v17  ;;  %533 = vmatpush.msrb.mxu0 %v1919_v18 }
  0x2c   :  { %568 = vmatpush.msrb.mxu1 %v1921_v19  ;;  %603 = vmatpush.msrb.mxu2 %v1926_v20 }
  0x2d   :  { %632 = vmatpush.msrb.mxu3 %v1928_v21 }
  0x8c   :  { %v91_v23 = vpop.f32.mrf.mxu0 }
  0x8d   :  { %v124_v24 = vpop.f32.mrf.mxu1  ;;  %v1974_v31 = vadd.f32 %v1560_v29, %v91_v23 }
  0x8e   :  { %v1976_v32 = vadd.f32 %v1561_v30, %v124_v24 }
  0x93   :  { %v157_v25 = vpop.f32.mrf.mxu2 }
  0x94   :  { %v190_v26 = vpop.f32.mrf.mxu3  ;;  %v94_v27 = vpop.f32.mrf.mxu0  ;;  %v1992_v51 = vadd.f32 %v1562_v43, %v157_v25 }
  0x95   :  { %v127_v28 = vpop.f32.mrf.mxu1  ;;  %v1978_v35 = vadd.f32 %v1560_v29, %v94_v27  ;;  %v1994_v52 = vadd.f32 %v1563_v44, %v190_v26 }
  0x96   :  { %v1980_v36 = vadd.f32 %v1561_v30, %v127_v28 }
  0x9b   :  { %v160_v33 = vpop.f32.mrf.mxu2 }
  0x9c   :  { %v193_v34 = vpop.f32.mrf.mxu3  ;;  %v236_v37 = vpop.f32.mrf.mxu0  ;;  %v1996_v53 = vadd.f32 %v1562_v43, %v160_v33 }
  0x9d   :  { %v270_v38 = vpop.f32.mrf.mxu1  ;;  %v240_v39 = vrot.slane %v236_v37, 1  ;;  %v243_v40 = vadd.f32 %v236_v37, %v1974_v31  ;;  %v1998_v54 = vadd.f32 %v1563_v44, %v193_v34 }
  0x9e   :  { %v274_v41 = vrot.slane %v270_v38, 1  ;;  %v277_v42 = vadd.f32 %v270_v38, %v1976_v32 }
  0x9f   :  { %v244_v45 = vadd.f32 %v240_v39, %v1978_v35  ;;  %v245_v46 = vmul.f32 0.5, %v243_v40 }
  0xa0   :  { %v278_v47 = vadd.f32 %v274_v41, %v1980_v36  ;;  %v279_v48 = vmul.f32 0.5, %v277_v42 }
  0xa1   :  { %v246_v49 = vmul.f32 0.5, %v244_v45  ;;  %1565 = vtanh.f32 %v245_v46 }
  0xa2   :  { %v280_v50 = vmul.f32 0.5, %v278_v47  ;;  %1567 = vtanh.f32 %v279_v48 }
  0xa3   :  { %1569 = vtanh.f32 %v246_v49  ;;  %v304_v55 = vpop.f32.mrf.mxu2 }
  0xa4   :  { %v332_v56 = vpop.f32.mrf.mxu3  ;;  %1571 = vtanh.f32 %v280_v50  ;;  %v308_v57 = vrot.slane %v304_v55, 1  ;;  %v311_v58 = vadd.f32 %v304_v55, %v1992_v51 }
  0xa5   :  { %v336_v59 = vrot.slane %v332_v56, 1  ;;  %v339_v60 = vadd.f32 %v332_v56, %v1994_v52 }
  0xa6   :  { %v312_v61 = vadd.f32 %v308_v57, %v1996_v53  ;;  %1573 = vtanh.f32 %v311_v58 }
  0xa7   :  { %v340_v62 = vadd.f32 %v336_v59, %v1998_v54  ;;  %v1566_v63 = vpop.eup %1565  ;;  %v341_v13 = vmul.f32 0.5, %v339_v60 }
  0xa8   :  { %v1568_v0 = vpop.eup %1567  ;;  %v249_v1 = vmul.f32 0.5, %v1566_v63  ;;  %1575 = vtanh.f32 %v312_v61 }
  0xa9   :  { %v342_v2 = vmul.f32 0.5, %v340_v62  ;;  %v1570_v3 = vpop.eup %1569  ;;  %v283_v4 = vmul.f32 0.5, %v1568_v0 }
  0xaa   :  { %v1572_v22 = vpop.eup %1571  ;;  %v250_v23 = vmul.f32 0.5, %v1570_v3  ;;  %v251_v24 = vadd.f32 0.5, %v249_v1 }
  0xab   :  { %v284_v25 = vmul.f32 0.5, %v1572_v22  ;;  %v285_v26 = vadd.f32 0.5, %v283_v4  ;;  %1577 = vtanh.f32 %v342_v2 }
  0xac   :  { %v1574_v27 = vpop.eup %1573  ;;  %v252_v28 = vadd.f32 0.5, %v250_v23  ;;  %1579 = vtanh.f32 %v341_v13 }
  0xad   :  { %v286_v29 = vadd.f32 0.5, %v284_v25  ;;  %v349_v30 = vmul.f32 0.0, %v285_v26  ;;  %v351_v33 = vmul.f32 %v1574_v27, %v251_v24 }
  0xae   :  { %v1576_v34 = vpop.eup %1575 }
  0xaf   :  { %v350_v37 = vmul.f32 0.0, %v286_v29  ;;  %v352_v38 = vmul.f32 %v1576_v34, %v252_v28  ;;  %v2004_v39 = vadd.f32 %v351_v33, %v349_v30 }
  0xb1   :  { %v1578_v40 = vpop.eup %1577  ;;  %v2006_v41 = vadd.f32 %v352_v38, %v350_v37  ;;  %1581 = vtanh.f32 %v2004_v39 }
  0xb2   :  { %v1580_v42 = vpop.eup %1579  ;;  %v346_v43 = vmul.f32 0.5, %v1578_v40 }
  0xb3   :  { %1583 = vtanh.f32 %v2006_v41  ;;  %v345_v44 = vmul.f32 0.5, %v1580_v42 }
  0xb4   :  { %v348_v46 = vadd.f32 0.5, %v346_v43 }
  0xb5   :  { %v347_v48 = vadd.f32 0.5, %v345_v44 }
  0xb7   :  { %v1582_v45 = vpop.eup %1581 }
  0xb8   :  { %v357_v50 = vmul.f32 %v1582_v45, %v347_v48 }
  0xb9   :  { %v1584_v47 = vpop.eup %1583 }
  0xba   :  { %v358_v49 = vmul.f32 %v1584_v47, %v348_v46  ;;  %v499_v47 = vrot.slane %v2006_v41, 7 }
  0xbc   :  { %v361_v55 = vrot.slane %v358_v49, 7 }
  0xbe   :  { %v363_v56 = vsel %vm362_vm2, %v361_v55, %v357_v50  ;;  %v498_v50 = vrot.slane %v2004_v39, 7 }
  0xbf   :  { %1525 = vmatmul.msk.f32.vlgmr.msra.gmra.mxu0 %vm215_vm3, %v363_v56  ;;  %1526 = vmatmul.msk.f32.vlgmr.msra.gmra.mxu1 %vm215_vm3, %v363_v56 }
  0xc0   :  { %1527 = vmatmul.msk.f32.vlgmr.msra.gmra.mxu2 %vm215_vm3, %v363_v56  ;;  %1528 = vmatmul.msk.f32.vlgmr.msra.gmra.mxu3 %vm215_vm3, %v363_v56 }
  0xc1   :  { %687 = vmatpush.msra.mxu0 %v1877_v5  ;;  %722 = vmatpush.msra.mxu1 %v1879_v6 }
  0xc2   :  { %757 = vmatpush.msra.mxu2 %v1883_v7  ;;  %786 = vmatpush.msra.mxu3 %v1885_v8 }
  0xc3   :  { %688 = vmatpush.msra.mxu0 %v1889_v9  ;;  %723 = vmatpush.msra.mxu1 %v1891_v10 }
  0xc4   :  { %758 = vmatpush.msra.mxu2 %v1895_v11  ;;  %787 = vmatpush.msra.mxu3 %v1897_v12 }
  0xc5   :  { %689 = vmatpush.msra.mxu0 %v1904_v14  ;;  %724 = vmatpush.msra.mxu1 %v1906_v15 }
  0xc6   :  { %759 = vmatpush.msra.mxu2 %v1910_v16  ;;  %788 = vmatpush.msra.mxu3 %v1912_v17 }
  0xc7   :  { %690 = vmatpush.msra.mxu0 %v1919_v18  ;;  %725 = vmatpush.msra.mxu1 %v1921_v19 }
  0xc8   :  { %760 = vmatpush.msra.mxu2 %v1926_v20  ;;  %789 = vmatpush.msra.mxu3 %v1928_v21 }
 0x13c   :  { %v383_v57 = vpop.f32.mrf.mxu0  ;;  %v417_v58 = vpop.f32.mrf.mxu1 }
 0x13d   :  { %v387_v59 = vrot.slane %v383_v57, 7  ;;  %v391_v60 = vadd.f32 %v383_v57, %v1978_v35  ;;  %v421_v61 = vrot.slane %v417_v58, 7  ;;  %v425_v62 = vadd.f32 %v417_v58, %v1980_v36 }
 0x13f   :  { %v390_v63 = vadd.f32 %v387_v59, %v1974_v31  ;;  %v393_v0 = vmul.f32 0.5, %v391_v60  ;;  %v424_v1 = vadd.f32 %v421_v61, %v1976_v32  ;;  %v427_v2 = vmul.f32 0.5, %v425_v62 }
 0x141   :  { %v392_v3 = vmul.f32 0.5, %v390_v63  ;;  %1585 = vtanh.f32 %v393_v0  ;;  %v426_v4 = vmul.f32 0.5, %v424_v1 }
 0x142   :  { %1587 = vtanh.f32 %v427_v2 }
 0x143   :  { %1589 = vtanh.f32 %v392_v3  ;;  %v451_v13 = vpop.f32.mrf.mxu2  ;;  %v479_v22 = vpop.f32.mrf.mxu3 }
 0x144   :  { %1591 = vtanh.f32 %v426_v4  ;;  %v455_v23 = vrot.slane %v451_v13, 7  ;;  %v459_v24 = vadd.f32 %v451_v13, %v1996_v53  ;;  %v483_v25 = vrot.slane %v479_v22, 7 }
 0x145   :  { %v487_v26 = vadd.f32 %v479_v22, %v1998_v54 }
 0x146   :  { %v458_v27 = vadd.f32 %v455_v23, %v1992_v51  ;;  %1593 = vtanh.f32 %v459_v24  ;;  %v486_v28 = vadd.f32 %v483_v25, %v1994_v52 }
 0x147   :  { %v1586_v29 = vpop.eup %1585  ;;  %v489_v40 = vmul.f32 0.5, %v487_v26 }
 0x148   :  { %v1588_v30 = vpop.eup %1587  ;;  %v397_v33 = vmul.f32 0.5, %v1586_v29  ;;  %1595 = vtanh.f32 %v458_v27  ;;  %v488_v34 = vmul.f32 0.5, %v486_v28 }
 0x149   :  { %v1590_v37 = vpop.eup %1589  ;;  %v431_v38 = vmul.f32 0.5, %v1588_v30 }
 0x14a   :  { %v1592_v42 = vpop.eup %1591  ;;  %v396_v43 = vmul.f32 0.5, %v1590_v37  ;;  %v399_v44 = vadd.f32 0.5, %v397_v33  ;;  %1597 = vtanh.f32 %v488_v34 }
 0x14b   :  { %v430_v45 = vmul.f32 0.5, %v1592_v42  ;;  %v433_v46 = vadd.f32 0.5, %v431_v38  ;;  %1599 = vtanh.f32 %v489_v40 }
 0x14c   :  { %v1594_v48 = vpop.eup %1593  ;;  %v398_v49 = vadd.f32 0.5, %v396_v43 }
 0x14d   :  { %v432_v55 = vadd.f32 0.5, %v430_v45  ;;  %v503_v56 = vmul.f32 %v499_v47, %v433_v46  ;;  %v505_v57 = vmul.f32 %v1594_v48, %v399_v44 }
 0x14e   :  { %v1596_v58 = vpop.eup %1595 }
 0x14f   :  { %v502_v59 = vmul.f32 %v498_v50, %v432_v55  ;;  %v504_v60 = vmul.f32 %v1596_v58, %v398_v49  ;;  %v2041_v61 = vadd.f32 %v505_v57, %v503_v56 }
 0x150   :  { %v1598_v62 = vpop.eup %1597 }
 0x151   :  { %v2043_v63 = vadd.f32 %v504_v60, %v502_v59  ;;  %1601 = vtanh.f32 %v2041_v61  ;;  %v1600_v41 = vpop.eup %1599  ;;  %v492_v0 = vmul.f32 0.5, %v1598_v62 }
 0x152   :  { %v493_v1 = vmul.f32 0.5, %v1600_v41 }
 0x153   :  { %1603 = vtanh.f32 %v2043_v63  ;;  %v494_v2 = vadd.f32 0.5, %v492_v0 }
 0x154   :  { %v495_v4 = vadd.f32 0.5, %v493_v1 }
 0x157   :  { %v1602_v39 = vpop.eup %1601 }
 0x158   :  { %v511_v22 = vmul.f32 %v1602_v39, %v495_v4 }
 0x159   :  { %v1604_v3 = vpop.eup %1603 }
 0x15a   :  { %v510_v13 = vmul.f32 %v1604_v3, %v494_v2 }
 0x15c   :  { %v514_v23 = vrot.slane %v510_v13, 1 }
 0x15e   :  { %v515_v24 = vsel %vm362_vm2, %v511_v22, %v514_v23 }
 0x15f   :  { %1529 = vmatmul.msk.f32.vlgmr.msrb.gmra.mxu0 %vm215_vm3, %v515_v24  ;;  %1530 = vmatmul.msk.f32.vlgmr.msrb.gmra.mxu1 %vm215_vm3, %v515_v24 }
 0x160   :  { %1531 = vmatmul.msk.f32.vlgmr.msrb.gmra.mxu2 %vm215_vm3, %v515_v24  ;;  %1532 = vmatmul.msk.f32.vlgmr.msrb.gmra.mxu3 %vm215_vm3, %v515_v24 }
 0x161   :  { %844 = vmatpush.msrb.mxu0 %v1877_v5  ;;  %879 = vmatpush.msrb.mxu1 %v1879_v6 }
 0x162   :  { %914 = vmatpush.msrb.mxu2 %v1883_v7  ;;  %943 = vmatpush.msrb.mxu3 %v1885_v8 }
 0x163   :  { %845 = vmatpush.msrb.mxu0 %v1889_v9  ;;  %880 = vmatpush.msrb.mxu1 %v1891_v10 }
 0x164   :  { %915 = vmatpush.msrb.mxu2 %v1895_v11  ;;  %944 = vmatpush.msrb.mxu3 %v1897_v12 }
 0x165   :  { %846 = vmatpush.msrb.mxu0 %v1904_v14  ;;  %881 = vmatpush.msrb.mxu1 %v1906_v15 }
 0x166   :  { %916 = vmatpush.msrb.mxu2 %v1910_v16  ;;  %945 = vmatpush.msrb.mxu3 %v1912_v17 }
 0x167   :  { %847 = vmatpush.msrb.mxu0 %v1919_v18  ;;  %882 = vmatpush.msrb.mxu1 %v1921_v19 }
 0x168   :  { %917 = vmatpush.msrb.mxu2 %v1926_v20  ;;  %946 = vmatpush.msrb.mxu3 %v1928_v21 }
 0x1dc   :  { %v535_v25 = vpop.f32.mrf.mxu0  ;;  %v570_v26 = vpop.f32.mrf.mxu1 }
 0x1dd   :  { %v539_v27 = vrot.slane %v535_v25, 6  ;;  %v540_v28 = vrot.slane %v535_v25, 7  ;;  %v574_v29 = vrot.slane %v570_v26, 6  ;;  %v575_v30 = vrot.slane %v570_v26, 7 }
 0x1de   :  { %v654_v25 = vrot.slane %v2043_v63, 7 }
 0x1df   :  { %v543_v33 = vadd.f32 %v539_v27, %v1974_v31  ;;  %v544_v34 = vadd.f32 %v540_v28, %v1978_v35  ;;  %v578_v37 = vadd.f32 %v574_v29, %v1976_v32  ;;  %v579_v38 = vadd.f32 %v575_v30, %v1980_v36 }
 0x1e0   :  { %v655_v28 = vrot.slane %v2041_v61, 7 }
 0x1e1   :  { %v545_v40 = vmul.f32 0.5, %v543_v33  ;;  %v546_v42 = vmul.f32 0.5, %v544_v34  ;;  %v580_v43 = vmul.f32 0.5, %v578_v37  ;;  %v581_v44 = vmul.f32 0.5, %v579_v38 }
 0x1e3   :  { %1605 = vtanh.f32 %v545_v40  ;;  %v605_v45 = vpop.f32.mrf.mxu2  ;;  %v634_v46 = vpop.f32.mrf.mxu3 }
 0x1e4   :  { %1607 = vtanh.f32 %v546_v42  ;;  %v609_v47 = vrot.slane %v605_v45, 6  ;;  %v610_v48 = vrot.slane %v605_v45, 7  ;;  %v638_v49 = vrot.slane %v634_v46, 6 }
 0x1e5   :  { %1609 = vtanh.f32 %v580_v43  ;;  %v639_v50 = vrot.slane %v634_v46, 7 }
 0x1e6   :  { %1611 = vtanh.f32 %v581_v44  ;;  %v613_v55 = vadd.f32 %v609_v47, %v1992_v51  ;;  %v614_v56 = vadd.f32 %v610_v48, %v1996_v53  ;;  %v642_v57 = vadd.f32 %v638_v49, %v1994_v52 }
 0x1e7   :  { %v643_v58 = vadd.f32 %v639_v50, %v1998_v54 }
 0x1e8   :  { %1613 = vtanh.f32 %v613_v55  ;;  %v644_v59 = vmul.f32 0.5, %v642_v57 }
 0x1e9   :  { %v1606_v60 = vpop.eup %1605  ;;  %1615 = vtanh.f32 %v614_v56  ;;  %v645_v62 = vmul.f32 0.5, %v643_v58 }
 0x1ea   :  { %v1608_v41 = vpop.eup %1607  ;;  %v549_v0 = vmul.f32 0.5, %v1606_v60  ;;  %1617 = vtanh.f32 %v644_v59 }
 0x1eb   :  { %v1610_v1 = vpop.eup %1609  ;;  %v550_v39 = vmul.f32 0.5, %v1608_v41  ;;  %1619 = vtanh.f32 %v645_v62 }
 0x1ec   :  { %v1612_v2 = vpop.eup %1611  ;;  %v551_v3 = vadd.f32 0.5, %v549_v0  ;;  %v584_v4 = vmul.f32 0.5, %v1610_v1 }
 0x1ed   :  { %v552_v13 = vadd.f32 0.5, %v550_v39  ;;  %v585_v22 = vmul.f32 0.5, %v1612_v2 }
 0x1ee   :  { %v1614_v23 = vpop.eup %1613  ;;  %v586_v24 = vadd.f32 0.5, %v584_v4 }
 0x1ef   :  { %v1616_v26 = vpop.eup %1615  ;;  %v587_v27 = vadd.f32 0.5, %v585_v22  ;;  %v660_v29 = vmul.f32 %v1614_v23, %v551_v3 }
 0x1f0   :  { %v658_v30 = vmul.f32 %v654_v25, %v586_v24  ;;  %v661_v33 = vmul.f32 %v1616_v26, %v552_v13  ;;  %v1618_v37 = vpop.eup %1617 }
 0x1f1   :  { %v659_v34 = vmul.f32 %v655_v28, %v587_v27  ;;  %v1620_v40 = vpop.eup %1619  ;;  %v648_v43 = vmul.f32 0.5, %v1618_v37 }
 0x1f2   :  { %v2078_v38 = vadd.f32 %v660_v29, %v658_v30  ;;  %v649_v63 = vmul.f32 0.5, %v1620_v40 }
 0x1f3   :  { %v2080_v42 = vadd.f32 %v661_v33, %v659_v34  ;;  %v650_v44 = vadd.f32 0.5, %v648_v43 }
 0x1f4   :  { %1621 = vtanh.f32 %v2078_v38  ;;  %v651_v46 = vadd.f32 0.5, %v649_v63 }
 0x1f5   :  { %1623 = vtanh.f32 %v2080_v42 }
 0x1fa   :  { %v1622_v45 = vpop.eup %1621 }
 0x1fb   :  { %v1624_v61 = vpop.eup %1623  ;;  %v666_v47 = vmul.f32 %v1622_v45, %v650_v44 }
 0x1fc   :  { %v667_v48 = vmul.f32 %v1624_v61, %v651_v46 }
 0x1fd   :  { %v670_v49 = vrot.slane %v666_v47, 2 }
 0x1fe   :  { %v671_v50 = vrot.slane %v667_v48, 1 }
 0x200   :  { %v672_v55 = vsel %vm362_vm2, %v671_v50, %v670_v49 }
 0x201   :  { %1533 = vmatmul.msk.f32.vlgmr.msra.gmra.mxu0 %vm215_vm3, %v672_v55  ;;  %1534 = vmatmul.msk.f32.vlgmr.msra.gmra.mxu1 %vm215_vm3, %v672_v55 }
 0x202   :  { %1535 = vmatmul.msk.f32.vlgmr.msra.gmra.mxu2 %vm215_vm3, %v672_v55  ;;  %1536 = vmatmul.msk.f32.vlgmr.msra.gmra.mxu3 %vm215_vm3, %v672_v55 }
 0x203   :  { %1001 = vmatpush.msra.mxu0 %v1877_v5  ;;  %1036 = vmatpush.msra.mxu1 %v1879_v6 }
 0x204   :  { %1071 = vmatpush.msra.mxu2 %v1883_v7  ;;  %1100 = vmatpush.msra.mxu3 %v1885_v8 }
 0x205   :  { %1002 = vmatpush.msra.mxu0 %v1889_v9  ;;  %1037 = vmatpush.msra.mxu1 %v1891_v10 }
 0x206   :  { %1072 = vmatpush.msra.mxu2 %v1895_v11  ;;  %1101 = vmatpush.msra.mxu3 %v1897_v12 }
 0x207   :  { %1003 = vmatpush.msra.mxu0 %v1904_v14  ;;  %1038 = vmatpush.msra.mxu1 %v1906_v15 }
 0x208   :  { %1073 = vmatpush.msra.mxu2 %v1910_v16  ;;  %1102 = vmatpush.msra.mxu3 %v1912_v17 }
 0x209   :  { %1004 = vmatpush.msra.mxu0 %v1919_v18  ;;  %1039 = vmatpush.msra.mxu1 %v1921_v19 }
 0x20a   :  { %1074 = vmatpush.msra.mxu2 %v1926_v20  ;;  %1103 = vmatpush.msra.mxu3 %v1928_v21 }
 0x27e   :  { %v692_v56 = vpop.f32.mrf.mxu0  ;;  %v727_v57 = vpop.f32.mrf.mxu1 }
 0x27f   :  { %v696_v58 = vrot.slane %v692_v56, 5  ;;  %v697_v59 = vrot.slane %v692_v56, 6  ;;  %v731_v60 = vrot.slane %v727_v57, 5  ;;  %v732_v62 = vrot.slane %v727_v57, 6 }
 0x280   :  { %v811_v56 = vrot.slane %v2078_v38, 7 }
 0x281   :  { %v700_v41 = vadd.f32 %v696_v58, %v1974_v31  ;;  %v701_v0 = vadd.f32 %v697_v59, %v1978_v35  ;;  %v735_v1 = vadd.f32 %v731_v60, %v1976_v32  ;;  %v736_v39 = vadd.f32 %v732_v62, %v1980_v36 }
 0x282   :  { %v812_v59 = vrot.slane %v2080_v42, 7 }
 0x283   :  { %v702_v2 = vmul.f32 0.5, %v700_v41  ;;  %v703_v3 = vmul.f32 0.5, %v701_v0  ;;  %v737_v4 = vmul.f32 0.5, %v735_v1  ;;  %v738_v13 = vmul.f32 0.5, %v736_v39 }
 0x285   :  { %1625 = vtanh.f32 %v702_v2  ;;  %v762_v22 = vpop.f32.mrf.mxu2  ;;  %v791_v23 = vpop.f32.mrf.mxu3 }
 0x286   :  { %1627 = vtanh.f32 %v703_v3  ;;  %v766_v24 = vrot.slane %v762_v22, 5  ;;  %v767_v25 = vrot.slane %v762_v22, 6  ;;  %v795_v26 = vrot.slane %v791_v23, 5 }
 0x287   :  { %1629 = vtanh.f32 %v737_v4  ;;  %v796_v27 = vrot.slane %v791_v23, 6 }
 0x288   :  { %1631 = vtanh.f32 %v738_v13  ;;  %v770_v28 = vadd.f32 %v766_v24, %v1992_v51  ;;  %v771_v29 = vadd.f32 %v767_v25, %v1996_v53  ;;  %v799_v30 = vadd.f32 %v795_v26, %v1994_v52 }
 0x289   :  { %v800_v33 = vadd.f32 %v796_v27, %v1998_v54 }
 0x28a   :  { %1633 = vtanh.f32 %v770_v28  ;;  %v801_v34 = vmul.f32 0.5, %v799_v30 }
 0x28b   :  { %v1626_v37 = vpop.eup %1625  ;;  %1635 = vtanh.f32 %v771_v29  ;;  %v802_v40 = vmul.f32 0.5, %v800_v33 }
 0x28c   :  { %v1628_v43 = vpop.eup %1627  ;;  %v706_v63 = vmul.f32 0.5, %v1626_v37  ;;  %1637 = vtanh.f32 %v801_v34 }
 0x28d   :  { %v1630_v44 = vpop.eup %1629  ;;  %v707_v45 = vmul.f32 0.5, %v1628_v43  ;;  %1639 = vtanh.f32 %v802_v40 }
 0x28e   :  { %v1632_v46 = vpop.eup %1631  ;;  %v708_v61 = vadd.f32 0.5, %v706_v63  ;;  %v741_v47 = vmul.f32 0.5, %v1630_v44 }
 0x28f   :  { %v709_v48 = vadd.f32 0.5, %v707_v45  ;;  %v742_v49 = vmul.f32 0.5, %v1632_v46 }
 0x290   :  { %v1634_v50 = vpop.eup %1633  ;;  %v743_v55 = vadd.f32 0.5, %v741_v47 }
 0x291   :  { %v1636_v57 = vpop.eup %1635  ;;  %v744_v58 = vadd.f32 0.5, %v742_v49  ;;  %v817_v60 = vmul.f32 %v1634_v50, %v708_v61 }
 0x292   :  { %v815_v62 = vmul.f32 %v811_v56, %v743_v55  ;;  %v818_v41 = vmul.f32 %v1636_v57, %v709_v48  ;;  %v1638_v1 = vpop.eup %1637 }
 0x293   :  { %v816_v0 = vmul.f32 %v812_v59, %v744_v58  ;;  %v1640_v2 = vpop.eup %1639  ;;  %v805_v4 = vmul.f32 0.5, %v1638_v1 }
 0x294   :  { %v2115_v39 = vadd.f32 %v817_v60, %v815_v62  ;;  %v806_v38 = vmul.f32 0.5, %v1640_v2 }
 0x295   :  { %v2117_v3 = vadd.f32 %v818_v41, %v816_v0  ;;  %v807_v13 = vadd.f32 0.5, %v805_v4 }
 0x296   :  { %1641 = vtanh.f32 %v2115_v39  ;;  %v808_v23 = vadd.f32 0.5, %v806_v38  ;;  %v968_v2 = vrot.slane %v2115_v39, 7 }
 0x297   :  { %1643 = vtanh.f32 %v2117_v3 }
 0x29c   :  { %v1642_v22 = vpop.eup %1641 }
 0x29d   :  { %v1644_v42 = vpop.eup %1643  ;;  %v823_v24 = vmul.f32 %v1642_v22, %v807_v13  ;;  %v969_v13 = vrot.slane %v2117_v3, 7 }
 0x29e   :  { %v824_v25 = vmul.f32 %v1644_v42, %v808_v23 }
 0x29f   :  { %v827_v26 = vrot.slane %v823_v24, 3 }
 0x2a0   :  { %v828_v27 = vrot.slane %v824_v25, 2 }
 0x2a2   :  { %v829_v28 = vsel %vm362_vm2, %v828_v27, %v827_v26 }
 0x2a3   :  { %1537 = vmatmul.msk.f32.vlgmr.msrb.gmra.mxu0 %vm215_vm3, %v829_v28  ;;  %1538 = vmatmul.msk.f32.vlgmr.msrb.gmra.mxu1 %vm215_vm3, %v829_v28 }
 0x2a4   :  { %1539 = vmatmul.msk.f32.vlgmr.msrb.gmra.mxu2 %vm215_vm3, %v829_v28  ;;  %1540 = vmatmul.msk.f32.vlgmr.msrb.gmra.mxu3 %vm215_vm3, %v829_v28 }
 0x2a5   :  { %1158 = vmatpush.msrb.mxu0 %v1877_v5  ;;  %1193 = vmatpush.msrb.mxu1 %v1879_v6 }
 0x2a6   :  { %1228 = vmatpush.msrb.mxu2 %v1883_v7  ;;  %1257 = vmatpush.msrb.mxu3 %v1885_v8 }
 0x2a7   :  { %1159 = vmatpush.msrb.mxu0 %v1889_v9  ;;  %1194 = vmatpush.msrb.mxu1 %v1891_v10 }
 0x2a8   :  { %1229 = vmatpush.msrb.mxu2 %v1895_v11  ;;  %1258 = vmatpush.msrb.mxu3 %v1897_v12 }
 0x2a9   :  { %1160 = vmatpush.msrb.mxu0 %v1904_v14  ;;  %1195 = vmatpush.msrb.mxu1 %v1906_v15 }
 0x2aa   :  { %1230 = vmatpush.msrb.mxu2 %v1910_v16  ;;  %1259 = vmatpush.msrb.mxu3 %v1912_v17 }
 0x2ab   :  { %1161 = vmatpush.msrb.mxu0 %v1919_v18  ;;  %1196 = vmatpush.msrb.mxu1 %v1921_v19 }
 0x2ac   :  { %1231 = vmatpush.msrb.mxu2 %v1926_v20  ;;  %1260 = vmatpush.msrb.mxu3 %v1928_v21 }
 0x320   :  { %v849_v5 = vpop.f32.mrf.mxu0  ;;  %v884_v6 = vpop.f32.mrf.mxu1 }
 0x321   :  { %v853_v7 = vrot.slane %v849_v5, 4  ;;  %v854_v8 = vrot.slane %v849_v5, 5  ;;  %v888_v9 = vrot.slane %v884_v6, 4  ;;  %v889_v10 = vrot.slane %v884_v6, 5 }
 0x323   :  { %v857_v11 = vadd.f32 %v853_v7, %v1974_v31  ;;  %v858_v12 = vadd.f32 %v854_v8, %v1978_v35  ;;  %v892_v14 = vadd.f32 %v888_v9, %v1976_v32  ;;  %v893_v15 = vadd.f32 %v889_v10, %v1980_v36 }
 0x325   :  { %v859_v16 = vmul.f32 0.5, %v857_v11  ;;  %v860_v17 = vmul.f32 0.5, %v858_v12  ;;  %v894_v29 = vmul.f32 0.5, %v892_v14  ;;  %v895_v30 = vmul.f32 0.5, %v893_v15  ;;  %v1725_v15 = vld [vmem:[#allocation2 + $0x18] sm:$0xff] }
 0x327   :  { %1645 = vtanh.f32 %v859_v16  ;;  %v919_v33 = vpop.f32.mrf.mxu2  ;;  %v948_v34 = vpop.f32.mrf.mxu3  ;;  %v1726_v16 = vld [vmem:[#allocation2 + $0x38] sm:$0xff] }
 0x328   :  { %1647 = vtanh.f32 %v860_v17  ;;  %v923_v37 = vrot.slane %v919_v33, 4  ;;  %v924_v40 = vrot.slane %v919_v33, 5  ;;  %v952_v43 = vrot.slane %v948_v34, 4  ;;  %v1727_v17 = vld [vmem:[#allocation2 + $0x58] sm:$0xff]  ;;  %v1730_v33 = vld [vmem:[#allocation2 + $0x30] sm:$0xff] }
 0x329   :  { %1649 = vtanh.f32 %v894_v29  ;;  %v953_v63 = vrot.slane %v948_v34, 5  ;;  %v1728_v29 = vld [vmem:[#allocation2 + $0x78] sm:$0xff]  ;;  %v1731_v34 = vld [vmem:[#allocation2 + $0x50] sm:$0xff] }
 0x32a   :  { %1651 = vtanh.f32 %v895_v30  ;;  %v927_v44 = vadd.f32 %v923_v37, %v1992_v51  ;;  %v928_v45 = vadd.f32 %v924_v40, %v1996_v53  ;;  %v956_v46 = vadd.f32 %v952_v43, %v1994_v52  ;;  %v1729_v30 = vld [vmem:[#allocation2 + $0x10] sm:$0xff]  ;;  %v1733_v40 = vld [vmem:[#allocation2 + $0x8] sm:$0xff] }
 0x32b   :  { %v957_v61 = vadd.f32 %v953_v63, %v1998_v54  ;;  %v1732_v37 = vld [vmem:[#allocation2 + $0x70] sm:$0xff]  ;;  %v1734_v43 = vld [vmem:[#allocation2 + $0x28] sm:$0xff] }
 0x32c   :  { %1653 = vtanh.f32 %v927_v44  ;;  %v958_v47 = vmul.f32 0.5, %v956_v46  ;;  %v1735_v63 = vld [vmem:[#allocation2 + $0x48] sm:$0xff] }
 0x32d   :  { %v1646_v48 = vpop.eup %1645  ;;  %1655 = vtanh.f32 %v928_v45  ;;  %v959_v49 = vmul.f32 0.5, %v957_v61  ;;  %v1736_v44 = vld [vmem:[#allocation2 + $0x68] sm:$0xff] }
 0x32e   :  { %v1648_v50 = vpop.eup %1647  ;;  %v863_v55 = vmul.f32 0.5, %v1646_v48  ;;  %1657 = vtanh.f32 %v958_v47 }
 0x32f   :  { %v1650_v56 = vpop.eup %1649  ;;  %v864_v57 = vmul.f32 0.5, %v1648_v50  ;;  %1659 = vtanh.f32 %v959_v49 }
 0x330   :  { %v1652_v58 = vpop.eup %1651  ;;  %v865_v59 = vadd.f32 0.5, %v863_v55  ;;  %v898_v60 = vmul.f32 0.5, %v1650_v56 }
 0x331   :  { %v866_v62 = vadd.f32 0.5, %v864_v57  ;;  %v899_v41 = vmul.f32 0.5, %v1652_v58 }
 0x332   :  { %v1654_v0 = vpop.eup %1653  ;;  %v900_v1 = vadd.f32 0.5, %v898_v60 }
 0x333   :  { %v1656_v4 = vpop.eup %1655  ;;  %v901_v38 = vadd.f32 0.5, %v899_v41  ;;  %v974_v22 = vmul.f32 %v1654_v0, %v865_v59 }
 0x334   :  { %v972_v23 = vmul.f32 %v968_v2, %v900_v1  ;;  %v975_v42 = vmul.f32 %v1656_v4, %v866_v62  ;;  %v1658_v25 = vpop.eup %1657 }
 0x335   :  { %v973_v24 = vmul.f32 %v969_v13, %v901_v38  ;;  %v1660_v27 = vpop.eup %1659  ;;  %v962_v5 = vmul.f32 0.5, %v1658_v25 }
 0x336   :  { %v2152_v26 = vadd.f32 %v974_v22, %v972_v23  ;;  %v963_v39 = vmul.f32 0.5, %v1660_v27 }
 0x337   :  { %v2154_v28 = vadd.f32 %v975_v42, %v973_v24  ;;  %v964_v6 = vadd.f32 0.5, %v962_v5 }
 0x338   :  { %1661 = vtanh.f32 %v2152_v26  ;;  %v965_v8 = vadd.f32 0.5, %v963_v39 }
 0x339   :  { %1663 = vtanh.f32 %v2154_v28 }
 0x33e   :  { %v1662_v7 = vpop.eup %1661 }
 0x33f   :  { %v1664_v3 = vpop.eup %1663  ;;  %v980_v9 = vmul.f32 %v1662_v7, %v964_v6 }
 0x340   :  { %v981_v10 = vmul.f32 %v1664_v3, %v965_v8 }
 0x341   :  { %v984_v11 = vrot.slane %v980_v9, 4 }
 0x342   :  { %v985_v12 = vrot.slane %v981_v10, 3  ;;  %v1125_v10 = vrot.slane %v2152_v26, 7 }
 0x344   :  { %v986_v14 = vsel %vm362_vm2, %v985_v12, %v984_v11 }
 0x345   :  { %1541 = vmatmul.msk.f32.vlgmr.msra.gmra.mxu0 %vm215_vm3, %v986_v14  ;;  %1542 = vmatmul.msk.f32.vlgmr.msra.gmra.mxu1 %vm215_vm3, %v986_v14 }
 0x346   :  { %1543 = vmatmul.msk.f32.vlgmr.msra.gmra.mxu2 %vm215_vm3, %v986_v14  ;;  %1544 = vmatmul.msk.f32.vlgmr.msra.gmra.mxu3 %vm215_vm3, %v986_v14  ;;  %v1126_v14 = vrot.slane %v2154_v28, 7 }
 0x347   :  { %1315 = vmatpush.msra.mxu0 %v1725_v15  ;;  %1350 = vmatpush.msra.mxu1 %v1726_v16 }
 0x348   :  { %1385 = vmatpush.msra.mxu2 %v1727_v17  ;;  %1414 = vmatpush.msra.mxu3 %v1728_v29 }
 0x349   :  { %1316 = vmatpush.msra.mxu0 %v1729_v30  ;;  %1351 = vmatpush.msra.mxu1 %v1730_v33 }
 0x34a   :  { %1386 = vmatpush.msra.mxu2 %v1731_v34  ;;  %1415 = vmatpush.msra.mxu3 %v1732_v37 }
 0x34b   :  { %1317 = vmatpush.msra.mxu0 %v1733_v40  ;;  %1352 = vmatpush.msra.mxu1 %v1734_v43 }
 0x34c   :  { %1387 = vmatpush.msra.mxu2 %v1735_v63  ;;  %1416 = vmatpush.msra.mxu3 %v1736_v44 }
 0x34d   :  { %1318 = vmatpush.msra.mxu0 %v1919_v18  ;;  %1353 = vmatpush.msra.mxu1 %v1921_v19 }
 0x34e   :  { %1388 = vmatpush.msra.mxu2 %v1926_v20  ;;  %1417 = vmatpush.msra.mxu3 %v1928_v21 }
 0x3c2   :  { %v1006_v45 = vpop.f32.mrf.mxu0  ;;  %v1041_v46 = vpop.f32.mrf.mxu1 }
 0x3c3   :  { %v1010_v61 = vrot.slane %v1006_v45, 3  ;;  %v1011_v47 = vrot.slane %v1006_v45, 4  ;;  %v1045_v48 = vrot.slane %v1041_v46, 3  ;;  %v1046_v49 = vrot.slane %v1041_v46, 4 }
 0x3c5   :  { %v1014_v50 = vadd.f32 %v1010_v61, %v1974_v31  ;;  %v1015_v55 = vadd.f32 %v1011_v47, %v1978_v35  ;;  %v1049_v56 = vadd.f32 %v1045_v48, %v1976_v32  ;;  %v1050_v18 = vadd.f32 %v1046_v49, %v1980_v36 }
 0x3c7   :  { %v1016_v57 = vmul.f32 0.5, %v1014_v50  ;;  %v1017_v19 = vmul.f32 0.5, %v1015_v55  ;;  %v1051_v58 = vmul.f32 0.5, %v1049_v56  ;;  %v1052_v20 = vmul.f32 0.5, %v1050_v18 }
 0x3c9   :  { %1665 = vtanh.f32 %v1016_v57  ;;  %v1076_v21 = vpop.f32.mrf.mxu2  ;;  %v1105_v59 = vpop.f32.mrf.mxu3 }
 0x3ca   :  { %1667 = vtanh.f32 %v1017_v19  ;;  %v1080_v60 = vrot.slane %v1076_v21, 3  ;;  %v1081_v62 = vrot.slane %v1076_v21, 4  ;;  %v1109_v41 = vrot.slane %v1105_v59, 3 }
 0x3cb   :  { %1669 = vtanh.f32 %v1051_v58  ;;  %v1110_v0 = vrot.slane %v1105_v59, 4 }
 0x3cc   :  { %1671 = vtanh.f32 %v1052_v20  ;;  %v1084_v1 = vadd.f32 %v1080_v60, %v1992_v51  ;;  %v1085_v2 = vadd.f32 %v1081_v62, %v1996_v53  ;;  %v1113_v4 = vadd.f32 %v1109_v41, %v1994_v52 }
 0x3cd   :  { %v1114_v38 = vadd.f32 %v1110_v0, %v1998_v54 }
 0x3ce   :  { %1673 = vtanh.f32 %v1084_v1  ;;  %v1115_v13 = vmul.f32 0.5, %v1113_v4 }
 0x3cf   :  { %v1666_v22 = vpop.eup %1665  ;;  %1675 = vtanh.f32 %v1085_v2  ;;  %v1116_v23 = vmul.f32 0.5, %v1114_v38 }
 0x3d0   :  { %v1668_v42 = vpop.eup %1667  ;;  %v1020_v24 = vmul.f32 0.5, %v1666_v22  ;;  %1677 = vtanh.f32 %v1115_v13 }
 0x3d1   :  { %v1670_v25 = vpop.eup %1669  ;;  %v1021_v27 = vmul.f32 0.5, %v1668_v42  ;;  %1679 = vtanh.f32 %v1116_v23 }
 0x3d2   :  { %v1672_v5 = vpop.eup %1671  ;;  %v1022_v39 = vadd.f32 0.5, %v1020_v24  ;;  %v1055_v6 = vmul.f32 0.5, %v1670_v25 }
 0x3d3   :  { %v1023_v7 = vadd.f32 0.5, %v1021_v27  ;;  %v1056_v8 = vmul.f32 0.5, %v1672_v5 }
 0x3d4   :  { %v1674_v3 = vpop.eup %1673  ;;  %v1057_v9 = vadd.f32 0.5, %v1055_v6 }
 0x3d5   :  { %v1676_v11 = vpop.eup %1675  ;;  %v1058_v12 = vadd.f32 0.5, %v1056_v8  ;;  %v1131_v15 = vmul.f32 %v1674_v3, %v1022_v39 }
 0x3d6   :  { %v1129_v16 = vmul.f32 %v1125_v10, %v1057_v9  ;;  %v1132_v17 = vmul.f32 %v1676_v11, %v1023_v7  ;;  %v1678_v30 = vpop.eup %1677 }
 0x3d7   :  { %v1130_v29 = vmul.f32 %v1126_v14, %v1058_v12  ;;  %v1680_v34 = vpop.eup %1679  ;;  %v1119_v40 = vmul.f32 0.5, %v1678_v30 }
 0x3d8   :  { %v2177_v33 = vadd.f32 %v1131_v15, %v1129_v16  ;;  %v1120_v26 = vmul.f32 0.5, %v1680_v34 }
 0x3d9   :  { %v2179_v37 = vadd.f32 %v1132_v17, %v1130_v29  ;;  %v1121_v43 = vadd.f32 0.5, %v1119_v40 }
 0x3da   :  { %1681 = vtanh.f32 %v2177_v33  ;;  %v1122_v44 = vadd.f32 0.5, %v1120_v26  ;;  %v1282_v16 = vrot.slane %v2177_v33, 7 }
 0x3db   :  { %1683 = vtanh.f32 %v2179_v37  ;;  %v1283_v30 = vrot.slane %v2179_v37, 7 }
 0x3e0   :  { %v1682_v63 = vpop.eup %1681 }
 0x3e1   :  { %v1684_v28 = vpop.eup %1683  ;;  %v1137_v45 = vmul.f32 %v1682_v63, %v1121_v43 }
 0x3e2   :  { %v1138_v46 = vmul.f32 %v1684_v28, %v1122_v44 }
 0x3e3   :  { %v1141_v61 = vrot.slane %v1137_v45, 5 }
 0x3e4   :  { %v1142_v47 = vrot.slane %v1138_v46, 4 }
 0x3e6   :  { %v1143_v48 = vsel %vm362_vm2, %v1142_v47, %v1141_v61 }
 0x3e7   :  { %1545 = vmatmul.msk.f32.vlgmr.msrb.gmra.mxu0 %vm215_vm3, %v1143_v48  ;;  %1546 = vmatmul.msk.f32.vlgmr.msrb.gmra.mxu1 %vm215_vm3, %v1143_v48 }
 0x3e8   :  { %1547 = vmatmul.msk.f32.vlgmr.msrb.gmra.mxu2 %vm215_vm3, %v1143_v48  ;;  %1548 = vmatmul.msk.f32.vlgmr.msrb.gmra.mxu3 %vm215_vm3, %v1143_v48 }
 0x464   :  { %v1163_v49 = vpop.f32.mrf.mxu0  ;;  %v1198_v50 = vpop.f32.mrf.mxu1 }
 0x465   :  { %v1167_v55 = vrot.slane %v1163_v49, 2  ;;  %v1168_v56 = vrot.slane %v1163_v49, 3  ;;  %v1202_v18 = vrot.slane %v1198_v50, 2  ;;  %v1203_v57 = vrot.slane %v1198_v50, 3 }
 0x467   :  { %v1171_v19 = vadd.f32 %v1167_v55, %v1974_v31  ;;  %v1172_v58 = vadd.f32 %v1168_v56, %v1978_v35  ;;  %v1206_v20 = vadd.f32 %v1202_v18, %v1976_v32  ;;  %v1207_v21 = vadd.f32 %v1203_v57, %v1980_v36  ;;  %v1456_v57 = vld [vmem:[#allocation5 + $0x18] sm:$0xff] }
 0x468   :  { %1480 = vmatpush.msrb.mxu0 %v1456_v57 }
 0x469   :  { %v1173_v59 = vmul.f32 0.5, %v1171_v19  ;;  %v1174_v60 = vmul.f32 0.5, %v1172_v58  ;;  %v1208_v62 = vmul.f32 0.5, %v1206_v20  ;;  %v1209_v41 = vmul.f32 0.5, %v1207_v21  ;;  %v1455_v19 = vld [vmem:[#allocation5 + $0x10] sm:$0xff] }
 0x46a   :  { %1481 = vmatpush.msrb.mxu0 %v1455_v19  ;;  %v1564_v19 = vld [vmem:[%s2232_s5] ss:$0 sm:$0xff] }
 0x46b   :  { %1685 = vtanh.f32 %v1173_v59  ;;  %v1233_v0 = vpop.f32.mrf.mxu2  ;;  %v1262_v1 = vpop.f32.mrf.mxu3 }
 0x46c   :  { %1687 = vtanh.f32 %v1174_v60  ;;  %v1237_v2 = vrot.slane %v1233_v0, 2  ;;  %v1238_v4 = vrot.slane %v1233_v0, 3  ;;  %v1266_v38 = vrot.slane %v1262_v1, 2  ;;  %v1453_v0 = vld [vmem:[#allocation5] sm:$0xff] }
 0x46d   :  { %1689 = vtanh.f32 %v1208_v62  ;;  %v1267_v13 = vrot.slane %v1262_v1, 3 }
 0x46e   :  { %1691 = vtanh.f32 %v1209_v41  ;;  %v1241_v22 = vadd.f32 %v1237_v2, %v1992_v51  ;;  %v1242_v23 = vadd.f32 %v1238_v4, %v1996_v53  ;;  %v1270_v42 = vadd.f32 %v1266_v38, %v1994_v52  ;;  %v1454_v41 = vld [vmem:[#allocation5 + $0x8] sm:$0xff] }
 0x46f   :  { %v1271_v24 = vadd.f32 %v1267_v13, %v1998_v54  ;;  %1482 = vmatpush.msrb.mxu0 %v1454_v41 }
 0x470   :  { %1693 = vtanh.f32 %v1241_v22  ;;  %v1272_v25 = vmul.f32 0.5, %v1270_v42 }
 0x471   :  { %v1686_v27 = vpop.eup %1685  ;;  %1695 = vtanh.f32 %v1242_v23  ;;  %v1273_v5 = vmul.f32 0.5, %v1271_v24  ;;  %1483 = vmatpush.msrb.mxu0 %v1453_v0 }
 0x472   :  { %v1688_v39 = vpop.eup %1687  ;;  %v1177_v6 = vmul.f32 0.5, %v1686_v27  ;;  %1697 = vtanh.f32 %v1272_v25 }
 0x473   :  { %v1690_v7 = vpop.eup %1689  ;;  %v1178_v8 = vmul.f32 0.5, %v1688_v39  ;;  %1699 = vtanh.f32 %v1273_v5 }
 0x474   :  { %v1692_v3 = vpop.eup %1691  ;;  %v1179_v9 = vadd.f32 0.5, %v1177_v6  ;;  %v1212_v10 = vmul.f32 0.5, %v1690_v7 }
 0x475   :  { %v1180_v11 = vadd.f32 0.5, %v1178_v8  ;;  %v1213_v12 = vmul.f32 0.5, %v1692_v3 }
 0x476   :  { %v1694_v14 = vpop.eup %1693  ;;  %v1214_v15 = vadd.f32 0.5, %v1212_v10 }
 0x477   :  { %v1696_v17 = vpop.eup %1695  ;;  %v1215_v29 = vadd.f32 0.5, %v1213_v12  ;;  %v1288_v34 = vmul.f32 %v1694_v14, %v1179_v9 }
 0x478   :  { %v1286_v40 = vmul.f32 %v1282_v16, %v1214_v15  ;;  %v1289_v26 = vmul.f32 %v1696_v17, %v1180_v11  ;;  %v1698_v63 = vpop.eup %1697 }
 0x479   :  { %v1287_v43 = vmul.f32 %v1283_v30, %v1215_v29  ;;  %v1700_v28 = vpop.eup %1699  ;;  %v1276_v46 = vmul.f32 0.5, %v1698_v63 }
 0x47a   :  { %v2198_v44 = vadd.f32 %v1288_v34, %v1286_v40  ;;  %v1277_v33 = vmul.f32 0.5, %v1700_v28 }
 0x47b   :  { %v2200_v45 = vadd.f32 %v1289_v26, %v1287_v43  ;;  %v1278_v61 = vadd.f32 0.5, %v1276_v46 }
 0x47c   :  { %1701 = vtanh.f32 %v2198_v44  ;;  %v1279_v48 = vadd.f32 0.5, %v1277_v33 }
 0x47d   :  { %1703 = vtanh.f32 %v2200_v45  ;;  %v1440_v34 = vrot.slane %v2200_v45, 7 }
 0x482   :  { %v1702_v47 = vpop.eup %1701 }
 0x483   :  { %v1704_v37 = vpop.eup %1703  ;;  %v1294_v49 = vmul.f32 %v1702_v47, %v1278_v61 }
 0x484   :  { %v1295_v50 = vmul.f32 %v1704_v37, %v1279_v48 }
 0x485   :  { %v1298_v55 = vrot.slane %v1294_v49, 6 }
 0x486   :  { %v1299_v56 = vrot.slane %v1295_v50, 5 }
 0x488   :  { %v1300_v18 = vsel %vm362_vm2, %v1299_v56, %v1298_v55 }
 0x489   :  { %1549 = vmatmul.msk.f32.vlgmr.msra.gmra.mxu0 %vm215_vm3, %v1300_v18  ;;  %1550 = vmatmul.msk.f32.vlgmr.msra.gmra.mxu1 %vm215_vm3, %v1300_v18 }
 0x48a   :  { %1551 = vmatmul.msk.f32.vlgmr.msra.gmra.mxu2 %vm215_vm3, %v1300_v18  ;;  %1552 = vmatmul.msk.f32.vlgmr.msra.gmra.mxu3 %vm215_vm3, %v1300_v18 }
 0x506   :  { %v1320_v58 = vpop.f32.mrf.mxu0  ;;  %v1355_v20 = vpop.f32.mrf.mxu1 }
 0x507   :  { %v1324_v21 = vrot.slane %v1320_v58, 1  ;;  %v1325_v59 = vrot.slane %v1320_v58, 2  ;;  %v1359_v60 = vrot.slane %v1355_v20, 1  ;;  %v1360_v62 = vrot.slane %v1355_v20, 2 }
 0x509   :  { %v1328_v1 = vadd.f32 %v1324_v21, %v1974_v31  ;;  %v1329_v2 = vadd.f32 %v1325_v59, %v1978_v35  ;;  %v1363_v4 = vadd.f32 %v1359_v60, %v1976_v32  ;;  %v1364_v38 = vadd.f32 %v1360_v62, %v1980_v36 }
 0x50b   :  { %v1330_v13 = vmul.f32 0.5, %v1328_v1  ;;  %v1331_v22 = vmul.f32 0.5, %v1329_v2  ;;  %v1365_v23 = vmul.f32 0.5, %v1363_v4  ;;  %v1366_v42 = vmul.f32 0.5, %v1364_v38 }
 0x50d   :  { %1705 = vtanh.f32 %v1330_v13  ;;  %v1390_v24 = vpop.f32.mrf.mxu2  ;;  %v1419_v25 = vpop.f32.mrf.mxu3 }
 0x50e   :  { %1707 = vtanh.f32 %v1331_v22  ;;  %v1394_v27 = vrot.slane %v1390_v24, 1  ;;  %v1395_v5 = vrot.slane %v1390_v24, 2  ;;  %v1423_v39 = vrot.slane %v1419_v25, 1 }
 0x50f   :  { %1709 = vtanh.f32 %v1365_v23  ;;  %v1424_v31 = vrot.slane %v1419_v25, 2 }
 0x510   :  { %1711 = vtanh.f32 %v1366_v42  ;;  %v1398_v35 = vadd.f32 %v1394_v27, %v1992_v51  ;;  %v1399_v32 = vadd.f32 %v1395_v5, %v1996_v53  ;;  %v1427_v36 = vadd.f32 %v1423_v39, %v1994_v52 }
 0x511   :  { %v1428_v6 = vadd.f32 %v1424_v31, %v1998_v54  ;;  %v1439_v54 = vrot.slane %v2198_v44, 7 }
 0x512   :  { %1713 = vtanh.f32 %v1398_v35  ;;  %v1429_v7 = vmul.f32 0.5, %v1427_v36 }
 0x513   :  { %v1706_v8 = vpop.eup %1705  ;;  %1715 = vtanh.f32 %v1399_v32  ;;  %v1430_v3 = vmul.f32 0.5, %v1428_v6 }
 0x514   :  { %v1708_v9 = vpop.eup %1707  ;;  %v1334_v10 = vmul.f32 0.5, %v1706_v8  ;;  %1717 = vtanh.f32 %v1429_v7 }
 0x515   :  { %v1710_v11 = vpop.eup %1709  ;;  %v1335_v12 = vmul.f32 0.5, %v1708_v9  ;;  %1719 = vtanh.f32 %v1430_v3 }
 0x516   :  { %v1712_v14 = vpop.eup %1711  ;;  %v1336_v15 = vadd.f32 0.5, %v1334_v10  ;;  %v1369_v16 = vmul.f32 0.5, %v1710_v11 }
 0x517   :  { %v1337_v51 = vadd.f32 0.5, %v1335_v12  ;;  %v1370_v17 = vmul.f32 0.5, %v1712_v14 }
 0x518   :  { %v1714_v53 = vpop.eup %1713  ;;  %v1371_v52 = vadd.f32 0.5, %v1369_v16 }
 0x519   :  { %v1716_v29 = vpop.eup %1715  ;;  %v1372_v30 = vadd.f32 0.5, %v1370_v17  ;;  %v1445_v40 = vmul.f32 %v1714_v53, %v1336_v15 }
 0x51a   :  { %v1443_v26 = vmul.f32 %v1439_v54, %v1371_v52  ;;  %v1446_v43 = vmul.f32 %v1716_v29, %v1337_v51  ;;  %v1718_v28 = vpop.eup %1717 }
 0x51b   :  { %v1444_v63 = vmul.f32 %v1440_v34, %v1372_v30  ;;  %v1720_v33 = vpop.eup %1719  ;;  %v1433_v47 = vmul.f32 0.5, %v1718_v28 }
 0x51c   :  { %v1447_v46 = vadd.f32 %v1445_v40, %v1443_v26  ;;  %v1434_v48 = vmul.f32 0.5, %v1720_v33 }
 0x51d   :  { %v1448_v61 = vadd.f32 %v1446_v43, %v1444_v63  ;;  %v1435_v37 = vadd.f32 0.5, %v1433_v47 }
 0x51e   :  { %1721 = vtanh.f32 %v1447_v46  ;;  %v1436_v50 = vadd.f32 0.5, %v1434_v48 }
 0x51f   :  { %1723 = vtanh.f32 %v1448_v61 }
 0x524   :  { %v1722_v49 = vpop.eup %1721 }
 0x525   :  { %v1724_v44 = vpop.eup %1723  ;;  %v1451_v55 = vmul.f32 %v1722_v49, %v1435_v37 }
 0x526   :  { %v1452_v56 = vmul.f32 %v1724_v44, %v1436_v50 }
 0x527   :  { %v1463_v18 = vrot.slane %v1451_v55, 7 }
 0x528   :  { %v1464_v45 = vrot.slane %v1452_v56, 6 }
 0x52a   :  { %v1465_v57 = vsel %vm362_vm2, %v1464_v45, %v1463_v18 }
 0x52b   :  { %1553 = vmatmul.msk.f32.vlgmr.msrb.gmra.mxu0 %vm215_vm3, %v1465_v57 }
 0x5a8   :  { %v1485_v58 = vpop.f32.mrf.mxu0 }
 0x5a9   :  { %v1486_v20 = vadd.f32 %v1564_v19, %v1485_v58 }
 0x5ab   :  { %1488 = vst [vmem:[#allocation7] sm:$0x3] %v1486_v20 }
 0x5ac   :  { %1499 = dma.vmem_to_hbm [thread:$0]  %s1495_s27, 32, %s1497_s30, [#allocation4]  }
 0x5ad   :  { %1813 = dma.done.wait [#allocation4], 32  }
 0x5ae   :  { %1814 = vsyncadd [#allocation4], 4294967264 }
 0x5af   :  { %1504 = vsyncpa [#allocation3], 1 }
 0x5b0   :  { %1505 = vsyncpa [#allocation6], 1 }
 0x5b1   :  { %1506 = vsyncpa [#allocation4], 1 }

</bundles_post_ra>
